<compile_context>
chip_gen: v7x
topology: tpu7x:2x2x1
jax: 0.10.0
libtpu: 0.0.40
codegen_flags: <defaults>
</compile_context>

<pallas_src>
import numpy as np
import jax
import jax.numpy as jnp
from jax.experimental import pallas as pl
from jax.experimental.pallas import tpu as pltpu

# Module weights (the nn.Parameters of the PyTorch module), baked in as constants.
_SCALE0, _SCALE1 = 1.0 / 16.0, 0.0
_HEIGHT = 1.3
_CENTER0, _CENTER1 = 0.66, 9.0

_LANES = 128              # samples per output row (lane width)
_FEATS = 2
_MAX_BLOCK_ROWS = 2048    # 2048 rows x 128 samples = 256K samples per grid step


def _deinterleave_matrix():
    """(256, 256) 0/1 matrix S with (X @ S)[:, :128] = even lanes (x0) and
    (X @ S)[:, 128:] = odd lanes (x1) of an interleaved 256-lane row."""
    s = np.zeros((_FEATS * _LANES, _FEATS * _LANES), np.float32)
    k = np.arange(_LANES)
    s[2 * k, k] = 1.0
    s[2 * k + 1, _LANES + k] = 1.0
    return jnp.asarray(s)


def _sigmoid_kernel(sel_ref, x_ref, o_ref):
    # x_ref:  [block_rows, 256]  natural interleaved layout (x0, x1, x0, x1, ...)
    # sel_ref:[256, 256]         0/1 de-interleave matrix (resident in VMEM)
    # o_ref:  [block_rows, 128]
    x = x_ref[...]
    # Exact in-VMEM de-interleave on the MXU (HIGHEST keeps full f32 precision;
    # the 0/1 selection then passes x0/x1 through unchanged).
    xs = jnp.dot(x, sel_ref[...], preferred_element_type=jnp.float32,
                 precision=jax.lax.Precision.HIGHEST)
    x0 = xs[:, :_LANES]
    x1 = xs[:, _LANES:]

    hscale = x1 * _SCALE0 + _SCALE1        # X'[:, 1:] @ scale   (ones col -> +scale[1])
    cen = x1 * _CENTER0 + _CENTER1         # X'[:, 1:] @ center  (ones col -> +center[1])
    z = (x0 - cen) / hscale                # exact divide: precision + x1==0 edge cases
    z = jnp.minimum(z, 80.0)               # guard exp overflow (result ~ -0 there, as torch)
    d = 1.0 + jnp.exp(z)                   # vscale*(sigmoid(z)-1) == -vscale / d
    r = pl.reciprocal(d, approx=True)      # EUP approx reciprocal ...
    inv_d = r * (2.0 - d * r)              # ... + one Newton step (d >= 1, ~1e-7 rel err)
    o_ref[...] = (-_HEIGHT) * hscale * inv_d


@jax.jit
def sigmoid_forward(x):
    """x: [N, 2] float -> [N] float32, same semantics as the PyTorch module."""
    n, f = x.shape
    assert f == _FEATS, "Sigmoid module expects 2 input features"
    x = x.astype(jnp.float32)

    n_rows = -(-n // _LANES)                                # ceil(N / 128)
    if n_rows <= _MAX_BLOCK_ROWS:
        grid = 1                                            # one block sized from N
    else:
        # Even number of grid steps so both v7x TensorCores get equal work.
        grid = 2 * (-(-n_rows // (2 * _MAX_BLOCK_ROWS)))
    block_rows = max(8, (-(-n_rows // grid) + 7) // 8 * 8)  # sublane multiple of 8
    rows_pad = grid * block_rows
    n_pad = rows_pad * _LANES

    if n_pad != n:
        # Pad with 1.0 so hscale stays nonzero in the (discarded) tail.
        x = jnp.pad(x, ((0, n_pad - n), (0, 0)), constant_values=1.0)

    # Free, contiguous view of the natural [N, 2] layout: one row = 128
    # consecutive samples with their features interleaved along lanes.
    x2d = x.reshape(rows_pad, _FEATS * _LANES)
    sel = _deinterleave_matrix()

    out2d = pl.pallas_call(
        _sigmoid_kernel,
        out_shape=jax.ShapeDtypeStruct((rows_pad, _LANES), jnp.float32),
        grid=(grid,),
        in_specs=[
            pl.BlockSpec((_FEATS * _LANES, _FEATS * _LANES), lambda i: (0, 0)),
            pl.BlockSpec((block_rows, _FEATS * _LANES), lambda i: (i, 0)),
        ],
        out_specs=pl.BlockSpec((block_rows, _LANES), lambda i: (i, 0)),
        compiler_params=pltpu.CompilerParams(
            dimension_semantics=("parallel",),
            vmem_limit_bytes=32 * 1024 * 1024),
    )(sel, x2d)

    out = out2d.reshape(-1)
    if n_pad != n:
        out = out[:n]
    return out


if __name__ == "__main__":
    # Deterministic small input: N samples x 2 features (N not a multiple of 128
    # to exercise the padded-tail path).
    N = 1000
    key = jax.random.PRNGKey(0)
    k0, k1 = jax.random.split(key)
    x0 = jax.random.normal(k0, (N,), dtype=jnp.float32) * 3.0
    x1 = jax.random.uniform(k1, (N,), dtype=jnp.float32, minval=1.0, maxval=20.0)
    x = jnp.stack([x0, x1], axis=-1)

    out = jax.block_until_ready(sigmoid_forward(x))

    # Pure-JAX reference of the PyTorch forward for verification.
    scale_w = jnp.asarray([_SCALE0, _SCALE1], jnp.float32)
    center_w = jnp.asarray([_CENTER0, _CENTER1], jnp.float32)
    x_aug = jnp.concatenate([x, jnp.ones_like(x[:, :1])], axis=-1)
    hscale = x_aug[:, 1:] @ scale_w
    vscale = hscale * jnp.float32(_HEIGHT)
    cen = x_aug[:, 1:] @ center_w
    ref = vscale * (jax.nn.sigmoid((x_aug[:, 0] - cen) / hscale) - 1.0)

    assert out.shape == (N,)
    assert jnp.allclose(out, ref, rtol=1e-5, atol=1e-6), "mismatch vs reference"
    print("KERNEL_OK")
</pallas_src>

<mosaic_0001>
module attributes {stable_mosaic.version = 11 : i64} {
  func.func @_sigmoid_kernel(%arg0: i32, %arg1: memref<256x256xf32, #tpu.memory_space<vmem>>, %arg2: memref<8x256xf32, #tpu.memory_space<vmem>>, %arg3: memref<8x128xf32, #tpu.memory_space<vmem>>) attributes {dimension_semantics = [#tpu.dimension_semantics<parallel>], iteration_bounds = array<i64: 1>, scalar_prefetch = 0 : i64, scratch_operands = 0 : i64, tpu.core_type = #tpu.core_type<tc>, window_params = [{pipeline_mode = #tpu.pipeline_mode<synchronous>, transform_indices = @transform_0, window_bounds = array<i64: 256, 256>}, {transform_indices = @transform_1, window_bounds = array<i64: 8, 256>}, {transform_indices = @transform_2, window_bounds = array<i64: 8, 128>}]} {
    %c0 = arith.constant 0 : index
    %c0_0 = arith.constant 0 : index
    %0 = vector.load %arg2[%c0, %c0_0] : memref<8x256xf32, #tpu.memory_space<vmem>>, vector<8x256xf32>
    %c0_1 = arith.constant 0 : index
    %c0_2 = arith.constant 0 : index
    %1 = vector.load %arg1[%c0_1, %c0_2] : memref<256x256xf32, #tpu.memory_space<vmem>>, vector<256x256xf32>
    %cst = arith.constant dense<0.000000e+00> : vector<8x256xf32>
    %2 = tpu.matmul %0, %1, %cst {dimension_numbers = #tpu.dot_dimension_numbers<[1], [0], [0], [1], [0, 0, 1, 1], [], []>, precision = #tpu.contract_precision<fp32>} : vector<8x256xf32>, vector<256x256xf32>, vector<8x256xf32> -> vector<8x256xf32>
    %3 = vector.extract_strided_slice %2 {offsets = [0, 0], sizes = [8, 128], strides = [1, 1]} : vector<8x256xf32> to vector<8x128xf32>
    %4 = vector.extract_strided_slice %2 {offsets = [0, 128], sizes = [8, 128], strides = [1, 1]} : vector<8x256xf32> to vector<8x128xf32>
    %cst_3 = arith.constant 6.250000e-02 : f32
    %5 = vector.broadcast %cst_3 : f32 to vector<8x128xf32>
    %6 = arith.mulf %4, %5 : vector<8x128xf32>
    %cst_4 = arith.constant 0.000000e+00 : f32
    %7 = vector.broadcast %cst_4 : f32 to vector<8x128xf32>
    %8 = arith.addf %6, %7 : vector<8x128xf32>
    %cst_5 = arith.constant 6.600000e-01 : f32
    %9 = vector.broadcast %cst_5 : f32 to vector<8x128xf32>
    %10 = arith.mulf %4, %9 : vector<8x128xf32>
    %cst_6 = arith.constant 9.000000e+00 : f32
    %11 = vector.broadcast %cst_6 : f32 to vector<8x128xf32>
    %12 = arith.addf %10, %11 : vector<8x128xf32>
    %13 = arith.subf %3, %12 : vector<8x128xf32>
    %14 = arith.divf %13, %8 : vector<8x128xf32>
    %cst_7 = arith.constant 8.000000e+01 : f32
    %15 = vector.broadcast %cst_7 : f32 to vector<8x128xf32>
    %16 = arith.minimumf %14, %15 : vector<8x128xf32>
    %17 = math.exp %16 : vector<8x128xf32>
    %cst_8 = arith.constant 1.000000e+00 : f32
    %18 = vector.broadcast %cst_8 : f32 to vector<8x128xf32>
    %19 = arith.addf %18, %17 : vector<8x128xf32>
    %20 = tpu.reciprocal %19 {approx = true} : vector<8x128xf32> -> vector<8x128xf32>
    %21 = arith.mulf %19, %20 : vector<8x128xf32>
    %cst_9 = arith.constant 2.000000e+00 : f32
    %22 = vector.broadcast %cst_9 : f32 to vector<8x128xf32>
    %23 = arith.subf %22, %21 : vector<8x128xf32>
    %24 = arith.mulf %20, %23 : vector<8x128xf32>
    %cst_10 = arith.constant -1.300000e+00 : f32
    %25 = vector.broadcast %cst_10 : f32 to vector<8x128xf32>
    %26 = arith.mulf %25, %8 : vector<8x128xf32>
    %27 = arith.mulf %26, %24 : vector<8x128xf32>
    %c0_11 = arith.constant 0 : index
    %c0_12 = arith.constant 0 : index
    %28 = vector.load %arg3[%c0_11, %c0_12] : memref<8x128xf32, #tpu.memory_space<vmem>>, vector<8x128xf32>
    tpu.vector_store %arg3[%c0_11, %c0_12], %27 {strides = array<i32>} : memref<8x128xf32, #tpu.memory_space<vmem>>, vector<8x128xf32>,
    return
  }
  func.func @transform_0(%arg0: i32) -> (i32, i32) {
    %c0_i32 = arith.constant 0 : i32
    %c0_i32_0 = arith.constant 0 : i32
    %c0_i32_1 = arith.constant 0 : i32
    return %c0_i32, %c0_i32_0 : i32, i32
  }
  func.func @transform_1(%arg0: i32) -> (i32, i32) {
    %c0_i32 = arith.constant 0 : i32
    %c0_i32_0 = arith.constant 0 : i32
    return %arg0, %c0_i32 : i32, i32
  }
  func.func @transform_2(%arg0: i32) -> (i32, i32) {
    %c0_i32 = arith.constant 0 : i32
    %c0_i32_0 = arith.constant 0 : i32
    return %arg0, %c0_i32 : i32, i32
  }
}

</mosaic_0001>

<bundles_post_ra>
// kernel: sigmoid_forward.1
= control target key start
LH: loop header
LB: loop body
LE: loop exit
PB: predicated region body
PF: predicated region fallthrough
CT: control target
= control target key end

     0   :  { %s2796_s0 = inlined_call_operand.vmem [shape: f32[256,256], index: 0, kind: input, shape index: {}]   ;;  %s2797_s1 = inlined_call_operand.vmem [shape: f32[8,256], index: 1, kind: input, shape index: {}]   ;;  %s2798_s2 = inlined_call_operand.hbm [shape: f32[8,128], index: 2, kind: output, shape index: {}]  }
   0x1   :  { %v15_v0 = vld [vmem:[%s2796_s0 + $0x8] sm:$0xff]  ;;  %v17_v1 = vld [vmem:[%s2796_s0 + $0x18] sm:$0xff]  ;;  %v14_v2 = vld [vmem:[%s2796_s0] sm:$0xff] }
   0x2   :  { %v78_v3 = vand.u32 4294901760, %v15_v0  ;;  %v82_v4 = vand.u32 4294901760, %v17_v1  ;;  %v16_v5 = vld [vmem:[%s2796_s0 + $0x10] sm:$0xff]  ;;  %v80_v6 = vand.u32 4294901760, %v14_v2  ;;  %v19_v7 = vld [vmem:[%s2796_s0 + $0x28] sm:$0xff]  ;;  %v21_v8 = vld [vmem:[%s2796_s0 + $0x38] sm:$0xff] }
   0x3   :  { %v84_v9 = vand.u32 4294901760, %v16_v5  ;;  %v86_v10 = vand.u32 4294901760, %v19_v7  ;;  %v90_v11 = vand.u32 4294901760, %v21_v8  ;;  %v18_v12 = vld [vmem:[%s2796_s0 + $0x20] sm:$0xff]  ;;  %v20_v13 = vld [vmem:[%s2796_s0 + $0x30] sm:$0xff]  ;;  %v23_v14 = vld [vmem:[%s2796_s0 + $0x48] sm:$0xff] }
   0x4   :  { %v1862_v15 = vpack.c.bf16 %v82_v4, %v78_v3  ;;  %v1867_v16 = vld [vmem:[%s2796_s0 + $0x58] sm:$0xff]  ;;  %v1872_v17 = vld [vmem:[%s2796_s0 + $0x40] sm:$0xff]  ;;  %v1877_v18 = vld [vmem:[%s2796_s0 + $0x50] sm:$0xff]  ;;  %v88_v23 = vand.u32 4294901760, %v18_v12  ;;  %v92_v24 = vand.u32 4294901760, %v20_v13  ;;  %v94_v25 = vand.u32 4294901760, %v23_v14 }
   0x5   :  { %v1879_v19 = vpack.c.bf16 %v84_v9, %v80_v6  ;;  %v1881_v20 = vpack.c.bf16 %v90_v11, %v86_v10  ;;  %v27_v21 = vld [vmem:[%s2796_s0 + $0x68] sm:$0xff]  ;;  %v29_v22 = vld [vmem:[%s2796_s0 + $0x78] sm:$0xff]  ;;  %v98_v26 = vand.u32 4294901760, %v1867_v16  ;;  %v96_v27 = vand.u32 4294901760, %v1872_v17  ;;  %v26_v32 = vld [vmem:[%s2796_s0 + $0x60] sm:$0xff] }
   0x6   :  { %2947 = vst [vmem:[#allocation5_spill] sm:$0xff] %v1862_v15  ;;  %1395 = vmatprep.subr.bf16.mxu1 %v1862_v15  ;;  %1587 = vmatprep.subr.bf16.mxu0 %v1862_v15  ;;  %v100_v28 = vand.u32 4294901760, %v1877_v18  ;;  %v1898_v29 = vpack.c.bf16 %v92_v24, %v88_v23  ;;  %v102_v30 = vand.u32 4294901760, %v27_v21  ;;  %v106_v31 = vand.u32 4294901760, %v29_v22  ;;  %v28_v33 = vld [vmem:[%s2796_s0 + $0x70] sm:$0xff]  ;;  %v31_v35 = vld [vmem:[%s2796_s0 + $0x88] sm:$0xff] }
   0x7   :  { %2948 = vst [vmem:[#allocation6_spill] sm:$0xff] %v1879_v19  ;;  %2949 = vst [vmem:[#allocation7_spill] sm:$0xff] %v1881_v20  ;;  %1397 = vmatpush1.bf16.msra.mxu1 %v1879_v19  ;;  %1589 = vmatpush1.bf16.msra.mxu0 %v1879_v19  ;;  %v1906_v34 = vpack.c.bf16 %v98_v26, %v94_v25  ;;  %v33_v36 = vld [vmem:[%s2796_s0 + $0x98] sm:$0xff]  ;;  %v104_v38 = vand.u32 4294901760, %v26_v32  ;;  %v108_v39 = vand.u32 4294901760, %v28_v33  ;;  %v110_v41 = vand.u32 4294901760, %v31_v35 }
   0x8   :  { %1399 = vmatprep.subr.bf16.mxu1 %v1881_v20  ;;  %1591 = vmatprep.subr.bf16.mxu0 %v1881_v20  ;;  %2950 = vst [vmem:[#allocation8_spill] sm:$0xff] %v1898_v29  ;;  %v1916_v37 = vpack.c.bf16 %v100_v28, %v96_v27  ;;  %v1920_v40 = vpack.c.bf16 %v106_v31, %v102_v30  ;;  %v114_v42 = vand.u32 4294901760, %v33_v36  ;;  %v30_v43 = vld [vmem:[%s2796_s0 + $0x80] sm:$0xff]  ;;  %v32_v44 = vld [vmem:[%s2796_s0 + $0x90] sm:$0xff]  ;;  %v35_v48 = vld [vmem:[%s2796_s0 + $0xa8] sm:$0xff] }
   0x9   :  { %2951 = vst [vmem:[#allocation9_spill] sm:$0xff] %v1906_v34  ;;  %v1928_v45 = vsub.f32 %v15_v0, %v78_v3  ;;  %v1930_v46 = vsub.f32 %v17_v1, %v82_v4  ;;  %v1932_v47 = vsub.f32 %v14_v2, %v80_v6  ;;  %v37_v49 = vld [vmem:[%s2796_s0 + $0xb8] sm:$0xff]  ;;  %v1940_v50 = vsub.f32 %v16_v5, %v84_v9  ;;  %v34_v58 = vld [vmem:[%s2796_s0 + $0xa0] sm:$0xff]  ;;  %v36_v59 = vld [vmem:[%s2796_s0 + $0xb0] sm:$0xff] }
   0xa   :  { %2952 = vst [vmem:[#allocation10_spill] sm:$0xff] %v1916_v37  ;;  %2953 = vst [vmem:[#allocation11_spill] sm:$0xff] %v1920_v40  ;;  %v1942_v51 = vsub.f32 %v19_v7, %v86_v10  ;;  %v1944_v52 = vsub.f32 %v21_v8, %v90_v11  ;;  %v1946_v53 = vsub.f32 %v18_v12, %v88_v23  ;;  %v112_v56 = vand.u32 4294901760, %v30_v43  ;;  %v39_v0 = vld [vmem:[%s2796_s0 + $0xc8] sm:$0xff]  ;;  %v41_v1 = vld [vmem:[%s2796_s0 + $0xd8] sm:$0xff] }
   0xb   :  { %1401 = vmatpush1.bf16.msra.mxu1 %v1898_v29  ;;  %1593 = vmatpush1.bf16.msra.mxu0 %v1898_v29  ;;  %2954 = vst [vmem:[#allocation12_spill] sm:$0xff] %v1928_v45  ;;  %2955 = vst [vmem:[#allocation13_spill] sm:$0xff] %v1930_v46  ;;  %v1948_v54 = vsub.f32 %v20_v13, %v92_v24  ;;  %v1952_v55 = vpack.c.bf16 %v108_v39, %v104_v38  ;;  %v116_v57 = vand.u32 4294901760, %v32_v44  ;;  %v38_v10 = vld [vmem:[%s2796_s0 + $0xc0] sm:$0xff]  ;;  %v40_v11 = vld [vmem:[%s2796_s0 + $0xd0] sm:$0xff] }
   0xc   :  { %1403 = vmatprep.subr.bf16.mxu1 %v1906_v34  ;;  %1595 = vmatprep.subr.bf16.mxu0 %v1906_v34  ;;  %2956 = vst [vmem:[#allocation14_spill] sm:$0xff] %v1932_v47  ;;  %2957 = vst [vmem:[#allocation15_spill] sm:$0xff] %v1940_v50  ;;  %v1960_v60 = vsub.f32 %v23_v14, %v94_v25  ;;  %v1964_v61 = vpack.c.bf16 %v114_v42, %v110_v41  ;;  %v118_v62 = vand.u32 4294901760, %v35_v48  ;;  %v45_v23 = vld [vmem:[%s2796_s0 + $0xf8] sm:$0xff] }
   0xd   :  { %2958 = vst [vmem:[#allocation16_spill] sm:$0xff] %v1942_v51  ;;  %2959 = vst [vmem:[#allocation17_spill] sm:$0xff] %v1944_v52  ;;  %v122_v63 = vand.u32 4294901760, %v37_v49  ;;  %v1973_v2 = vsub.f32 %v1867_v16, %v98_v26  ;;  %v1976_v3 = vsub.f32 %v1872_v17, %v96_v27  ;;  %v1979_v4 = vsub.f32 %v1877_v18, %v100_v28  ;;  %v42_v28 = vld [vmem:[%s2796_s0 + $0xe0] sm:$0xff] }
   0xe   :  { %2960 = vst [vmem:[#allocation18_spill] sm:$0xff] %v1952_v55  ;;  %2961 = vst [vmem:[#allocation19_spill] sm:$0xff] %v1964_v61  ;;  %v1981_v5 = vsub.f32 %v27_v21, %v102_v30  ;;  %v1983_v6 = vsub.f32 %v29_v22, %v106_v31  ;;  %v1985_v7 = vsub.f32 %v26_v32, %v104_v38  ;;  %v120_v8 = vand.u32 4294901760, %v34_v58  ;;  %v43_v22 = vld [vmem:[%s2796_s0 + $0xe8] sm:$0xff]  ;;  %v44_v30 = vld [vmem:[%s2796_s0 + $0xf0] sm:$0xff] }
   0xf   :  { %1405 = vmatpush1.bf16.msra.mxu1 %v1916_v37  ;;  %1597 = vmatpush1.bf16.msra.mxu0 %v1916_v37  ;;  %2962 = vst [vmem:[#allocation20_spill] sm:$0xff] %v1976_v3  ;;  %2963 = vst [vmem:[#allocation21_spill] sm:$0xff] %v1979_v4  ;;  %v124_v9 = vand.u32 4294901760, %v36_v59  ;;  %v1994_v12 = vsub.f32 %v28_v33, %v108_v39  ;;  %v1997_v13 = vpack.c.bf16 %v116_v57, %v112_v56  ;;  %v49_v38 = vld [vmem:[%s2796_s0 + $0x118] sm:$0xff] }
  0x10   :  { %1407 = vmatprep.subr.bf16.mxu1 %v1920_v40  ;;  %1599 = vmatprep.subr.bf16.mxu0 %v1920_v40  ;;  %2964 = vst [vmem:[#allocation22_spill] sm:$0xff] %v1981_v5  ;;  %2965 = vst [vmem:[#allocation23_spill] sm:$0xff] %v1985_v7  ;;  %v126_v14 = vand.u32 4294901760, %v39_v0  ;;  %v130_v16 = vand.u32 4294901760, %v41_v1  ;;  %v2000_v17 = vsub.f32 %v31_v35, %v110_v41  ;;  %v128_v26 = vand.u32 4294901760, %v38_v10 }
  0x11   :  { %2966 = vst [vmem:[#allocation24_spill] sm:$0xff] %v1994_v12  ;;  %2967 = vst [vmem:[#allocation25_spill] sm:$0xff] %v1997_v13  ;;  %v2002_v18 = vsub.f32 %v33_v36, %v114_v42  ;;  %v2005_v21 = vpack.c.bf16 %v122_v63, %v118_v62  ;;  %v2013_v24 = vsub.f32 %v30_v43, %v112_v56  ;;  %v132_v27 = vand.u32 4294901760, %v40_v11  ;;  %v47_v36 = vld [vmem:[%s2796_s0 + $0x108] sm:$0xff] }
  0x12   :  { %2968 = vst [vmem:[#allocation26_spill] sm:$0xff] %v2000_v17  ;;  %v2015_v25 = vsub.f32 %v32_v44, %v116_v57  ;;  %v2023_v31 = vsub.f32 %v35_v48, %v118_v62  ;;  %v2025_v32 = vsub.f32 %v37_v49, %v122_v63  ;;  %v2027_v33 = vpack.c.bf16 %v124_v9, %v120_v8  ;;  %v46_v44 = vld [vmem:[%s2796_s0 + $0x100] sm:$0xff]  ;;  %v48_v48 = vld [vmem:[%s2796_s0 + $0x110] sm:$0xff]  ;;  %v53_v62 = vld [vmem:[%s2796_s0 + $0x138] sm:$0xff] }
  0x13   :  { %1409 = vmatpush1.bf16.msra.mxu1 %v1952_v55  ;;  %1601 = vmatpush1.bf16.msra.mxu0 %v1952_v55  ;;  %2969 = vst [vmem:[#allocation27_spill] sm:$0xff] %v2002_v18  ;;  %2970 = vst [vmem:[#allocation28_spill] sm:$0xff] %v2005_v21  ;;  %v2029_v35 = vsub.f32 %v34_v58, %v120_v8  ;;  %v2039_v39 = vsub.f32 %v36_v59, %v124_v9  ;;  %v134_v42 = vand.u32 4294901760, %v43_v22  ;;  %v51_v59 = vld [vmem:[%s2796_s0 + $0x128] sm:$0xff] }
  0x14   :  { %1411 = vmatprep.subr.bf16.mxu1 %v1964_v61  ;;  %1603 = vmatprep.subr.bf16.mxu0 %v1964_v61  ;;  %2971 = vst [vmem:[#allocation29_spill] sm:$0xff] %v2013_v24  ;;  %2972 = vst [vmem:[#allocation30_spill] sm:$0xff] %v2015_v25  ;;  %v2041_v41 = vpack.c.bf16 %v130_v16, %v126_v14  ;;  %v138_v43 = vand.u32 4294901760, %v45_v23  ;;  %v2051_v49 = vsub.f32 %v39_v0, %v126_v14 }
  0x15   :  { %2973 = vst [vmem:[#allocation31_spill] sm:$0xff] %v2023_v31  ;;  %2974 = vst [vmem:[#allocation32_spill] sm:$0xff] %v2025_v32  ;;  %v2053_v56 = vsub.f32 %v41_v1, %v130_v16  ;;  %v136_v57 = vand.u32 4294901760, %v42_v28  ;;  %v140_v58 = vand.u32 4294901760, %v44_v30 }
  0x16   :  { %2975 = vst [vmem:[#allocation33_spill] sm:$0xff] %v2027_v33  ;;  %2976 = vst [vmem:[#allocation34_spill] sm:$0xff] %v2029_v35 }
  0x17   :  { %1413 = vmatpush1.bf16.msra.mxu1 %v1997_v13  ;;  %1605 = vmatpush1.bf16.msra.mxu0 %v1997_v13  ;;  %2977 = vst [vmem:[#allocation35_spill] sm:$0xff] %v2039_v39  ;;  %2978 = vst [vmem:[#allocation36_spill] sm:$0xff] %v2041_v41 }
  0x18   :  { %1415 = vmatprep.subr.bf16.mxu1 %v2005_v21  ;;  %1607 = vmatprep.subr.bf16.mxu0 %v2005_v21  ;;  %2979 = vst [vmem:[#allocation37_spill] sm:$0xff] %v2051_v49  ;;  %2980 = vst [vmem:[#allocation38_spill] sm:$0xff] %v2053_v56 }
  0x19   :  { %7 = vsyncpa [#allocation3], 0  ;;  %v2061_v63 = vpack.c.bf16 %v132_v27, %v128_v26  ;;  %v2063_v8 = vsub.f32 %v38_v10, %v128_v26  ;;  %v142_v9 = vand.u32 4294901760, %v47_v36  ;;  %v146_v0 = vand.u32 4294901760, %v49_v38  ;;  %v50_v1 = vld [vmem:[%s2796_s0 + $0x120] sm:$0xff]  ;;  %v52_v14 = vld [vmem:[%s2796_s0 + $0x130] sm:$0xff] }
  0x1a   :  { %v2071_v16 = vsub.f32 %v40_v11, %v132_v27  ;;  %v2073_v21 = vsub.f32 %v43_v22, %v134_v42  ;;  %v144_v13 = vand.u32 4294901760, %v46_v44  ;;  %v148_v61 = vand.u32 4294901760, %v48_v48  ;;  %v55_v37 = vld [vmem:[%s2796_s0 + $0x148] sm:$0xff]  ;;  %v57_v11 = vld [vmem:[%s2796_s0 + $0x158] sm:$0xff] }
  0x1b   :  { %2981 = vst [vmem:[#allocation39_spill] sm:$0xff] %v2061_v63  ;;  %2982 = vst [vmem:[#allocation40_spill] sm:$0xff] %v2063_v8  ;;  %1417 = vmatpush1.bf16.msra.mxu1 %v2027_v33  ;;  %1609 = vmatpush1.bf16.msra.mxu0 %v2027_v33  ;;  %v2077_v10 = vpack.c.bf16 %v138_v43, %v134_v42  ;;  %v2079_v26 = vsub.f32 %v45_v23, %v138_v43  ;;  %v150_v55 = vand.u32 4294901760, %v51_v59  ;;  %v54_v43 = vld [vmem:[%s2796_s0 + $0x140] sm:$0xff]  ;;  %v56_v33 = vld [vmem:[%s2796_s0 + $0x150] sm:$0xff] }
  0x1c   :  { %2983 = vst [vmem:[#allocation41_spill] sm:$0xff] %v2071_v16  ;;  %2984 = vst [vmem:[#allocation42_spill] sm:$0xff] %v2073_v21  ;;  %v154_v40 = vand.u32 4294901760, %v53_v62  ;;  %1419 = vmatprep.subr.bf16.mxu1 %v2041_v41  ;;  %1611 = vmatprep.subr.bf16.mxu0 %v2041_v41  ;;  %v2089_v22 = vpack.c.bf16 %v140_v58, %v136_v57  ;;  %v2091_v27 = vsub.f32 %v42_v28, %v136_v57 }
  0x1d   :  { %2985 = vst [vmem:[#allocation43_spill] sm:$0xff] %v2077_v10  ;;  %2986 = vst [vmem:[#allocation44_spill] sm:$0xff] %v2079_v26  ;;  %v152_v23 = vand.u32 4294901760, %v50_v1  ;;  %v156_v42 = vand.u32 4294901760, %v52_v14  ;;  %v2099_v34 = vsub.f32 %v44_v30, %v140_v58  ;;  %v2101_v29 = vpack.c.bf16 %v146_v0, %v142_v9  ;;  %v61_v30 = vld [vmem:[%s2796_s0 + $0x178] sm:$0xff]  ;;  %v58_v58 = vld [vmem:[%s2796_s0 + $0x160] sm:$0xff] }
  0x1e   :  { %2987 = vst [vmem:[#allocation45_spill] sm:$0xff] %v2089_v22  ;;  %2988 = vst [vmem:[#allocation46_spill] sm:$0xff] %v2091_v27  ;;  %v2103_v20 = vsub.f32 %v47_v36, %v142_v9  ;;  %v2105_v41 = vsub.f32 %v49_v38, %v146_v0  ;;  %v2107_v28 = vpack.c.bf16 %v148_v61, %v144_v13  ;;  %v158_v19 = vand.u32 4294901760, %v55_v37  ;;  %v59_v27 = vld [vmem:[%s2796_s0 + $0x168] sm:$0xff]  ;;  %v60_v9 = vld [vmem:[%s2796_s0 + $0x170] sm:$0xff] }
  0x1f   :  { %2989 = vst [vmem:[#allocation47_spill] sm:$0xff] %v2099_v34  ;;  %2990 = vst [vmem:[#allocation48_spill] sm:$0xff] %v2101_v29  ;;  %v2109_v57 = vsub.f32 %v46_v44, %v144_v13  ;;  %v162_v15 = vand.u32 4294901760, %v57_v11  ;;  %1421 = vmatpush1.bf16.msra.mxu1 %v2061_v63  ;;  %1613 = vmatpush1.bf16.msra.mxu0 %v2061_v63  ;;  %v2119_v36 = vsub.f32 %v48_v48, %v148_v61  ;;  %v63_v63 = vld [vmem:[%s2796_s0 + $0x188] sm:$0xff] }
  0x20   :  { %2991 = vst [vmem:[#allocation49_spill] sm:$0xff] %v2103_v20  ;;  %2992 = vst [vmem:[#allocation50_spill] sm:$0xff] %v2105_v41  ;;  %v2121_v38 = vpack.c.bf16 %v154_v40, %v150_v55  ;;  %v160_v13 = vand.u32 4294901760, %v54_v43  ;;  %v164_v44 = vand.u32 4294901760, %v56_v33  ;;  %1423 = vmatprep.subr.bf16.mxu1 %v2077_v10  ;;  %1615 = vmatprep.subr.bf16.mxu0 %v2077_v10  ;;  %v166_v20 = vand.u32 4294901760, %v59_v27 }
  0x21   :  { %2993 = vst [vmem:[#allocation51_spill] sm:$0xff] %v2107_v28  ;;  %2994 = vst [vmem:[#allocation52_spill] sm:$0xff] %v2109_v57  ;;  %v2131_v0 = vsub.f32 %v51_v59, %v150_v55  ;;  %v2133_v61 = vsub.f32 %v53_v62, %v154_v40  ;;  %v2135_v48 = vpack.c.bf16 %v156_v42, %v152_v23  ;;  %v170_v10 = vand.u32 4294901760, %v61_v30  ;;  %v62_v40 = vld [vmem:[%s2796_s0 + $0x180] sm:$0xff]  ;;  %v64_v55 = vld [vmem:[%s2796_s0 + $0x190] sm:$0xff] }
  0x22   :  { %2995 = vst [vmem:[#allocation53_spill] sm:$0xff] %v2119_v36  ;;  %2996 = vst [vmem:[#allocation54_spill] sm:$0xff] %v2121_v38  ;;  %v65_v36 = vld [vmem:[%s2796_s0 + $0x198] sm:$0xff]  ;;  %v2143_v57 = vsub.f32 %v50_v1, %v152_v23  ;;  %v2145_v41 = vsub.f32 %v52_v14, %v156_v42  ;;  %v2153_v59 = vpack.c.bf16 %v162_v15, %v158_v19  ;;  %v67_v1 = vld [vmem:[%s2796_s0 + $0x1a8] sm:$0xff]  ;;  %v180_v34 = vand.u32 4294901760, %v64_v55 }
  0x23   :  { %2997 = vst [vmem:[#allocation55_spill] sm:$0xff] %v2131_v0  ;;  %2998 = vst [vmem:[#allocation56_spill] sm:$0xff] %v2133_v61  ;;  %v2155_v62 = vsub.f32 %v55_v37, %v158_v19  ;;  %v168_v61 = vand.u32 4294901760, %v58_v58  ;;  %v172_v0 = vand.u32 4294901760, %v60_v9  ;;  %v69_v14 = vld [vmem:[%s2796_s0 + $0x1b8] sm:$0xff]  ;;  %1425 = vmatpush1.bf16.msra.mxu1 %v2089_v22  ;;  %1617 = vmatpush1.bf16.msra.mxu0 %v2089_v22  ;;  %v174_v19 = vand.u32 4294901760, %v63_v63 }
  0x24   :  { %2999 = vst [vmem:[#allocation57_spill] sm:$0xff] %v2135_v48  ;;  %3000 = vst [vmem:[#allocation58_spill] sm:$0xff] %v2143_v57  ;;  %v2165_v23 = vsub.f32 %v57_v11, %v162_v15  ;;  %v2167_v42 = vpack.c.bf16 %v164_v44, %v160_v13  ;;  %v178_v37 = vand.u32 4294901760, %v65_v36  ;;  %1427 = vmatprep.subr.bf16.mxu1 %v2101_v29  ;;  %1619 = vmatprep.subr.bf16.mxu0 %v2101_v29  ;;  %v66_v22 = vld [vmem:[%s2796_s0 + $0x1a0] sm:$0xff]  ;;  %v68_v29 = vld [vmem:[%s2796_s0 + $0x1b0] sm:$0xff] }
  0x25   :  { %3001 = vst [vmem:[#allocation59_spill] sm:$0xff] %v2145_v41  ;;  %3002 = vst [vmem:[#allocation60_spill] sm:$0xff] %v2153_v59  ;;  %v2173_v41 = vsub.f32 %v56_v33, %v164_v44  ;;  %v176_v57 = vand.u32 4294901760, %v62_v40  ;;  %v2175_v26 = vpack.c.bf16 %v170_v10, %v166_v20  ;;  %v2177_v21 = vsub.f32 %v59_v27, %v166_v20  ;;  %v13_v20 = vld [vmem:[%s2797_s1 + $0x8] sm:$0xff] }
  0x26   :  { %3003 = vst [vmem:[#allocation61_spill] sm:$0xff] %v2155_v62  ;;  %3004 = vst [vmem:[#allocation62_spill] sm:$0xff] %v2165_v23  ;;  %v2171_v62 = vsub.f32 %v54_v43, %v160_v13  ;;  %v182_v15 = vand.u32 4294901760, %v67_v1  ;;  %v186_v11 = vand.u32 4294901760, %v69_v14  ;;  %v2185_v43 = vsub.f32 %v61_v30, %v170_v10  ;;  %v71_v30 = vld [vmem:[%s2796_s0 + $0x1c8] sm:$0xff] }
  0x27   :  { %3005 = vst [vmem:[#allocation63_spill] sm:$0xff] %v2167_v42  ;;  %3007 = vst [vmem:[#allocation65_spill] sm:$0xff] %v2173_v41  ;;  %v2187_v33 = vpack.c.bf16 %v172_v0, %v168_v61  ;;  %v2189_v13 = vsub.f32 %v58_v58, %v168_v61  ;;  %v2191_v44 = vsub.f32 %v60_v9, %v172_v0  ;;  %1429 = vmatpush1.bf16.msra.mxu1 %v2107_v28  ;;  %v73_v58 = vld [vmem:[%s2796_s0 + $0x1d8] sm:$0xff]  ;;  %v12_v9 = vld [vmem:[%s2797_s1] sm:$0xff] }
  0x28   :  { %3006 = vst [vmem:[#allocation64_spill] sm:$0xff] %v2171_v62  ;;  %3008 = vst [vmem:[#allocation66_spill] sm:$0xff] %v2175_v26  ;;  %1621 = vmatpush1.bf16.msra.mxu0 %v2107_v28  ;;  %v2198_v27 = vpack.c.bf16 %v178_v37, %v174_v19  ;;  %v2202_v10 = vsub.f32 %v65_v36, %v178_v37  ;;  %1431 = vmatprep.subr.bf16.mxu1 %v2121_v38  ;;  %v184_v0 = vand.u32 4294901760, %v66_v22  ;;  %v72_v37 = vld [vmem:[%s2796_s0 + $0x1d0] sm:$0xff] }
  0x29   :  { %3009 = vst [vmem:[#allocation67_spill] sm:$0xff] %v2177_v21  ;;  %3010 = vst [vmem:[#allocation68_spill] sm:$0xff] %v2185_v43  ;;  %v2200_v21 = vsub.f32 %v63_v63, %v174_v19  ;;  %1623 = vmatprep.subr.bf16.mxu0 %v2121_v38  ;;  %v2215_v63 = vpack.c.bf16 %v180_v34, %v176_v57  ;;  %v2217_v36 = vsub.f32 %v62_v40, %v176_v57  ;;  %v70_v19 = vld [vmem:[%s2796_s0 + $0x1c0] sm:$0xff] }
  0x2a   :  { %3011 = vst [vmem:[#allocation69_spill] sm:$0xff] %v2187_v33  ;;  %3012 = vst [vmem:[#allocation70_spill] sm:$0xff] %v2189_v13  ;;  %v188_v61 = vand.u32 4294901760, %v68_v29  ;;  %v2225_v28 = vsub.f32 %v64_v55, %v180_v34  ;;  %v2231_v38 = vand.u32 4294901760, %v13_v20  ;;  %v2233_v57 = vsub.f32 %v69_v14, %v186_v11 }
  0x2b   :  { %3013 = vst [vmem:[#allocation71_spill] sm:$0xff] %v2191_v44  ;;  %3014 = vst [vmem:[#allocation72_spill] sm:$0xff] %v2198_v27  ;;  %v190_v40 = vand.u32 4294901760, %v71_v30  ;;  %v2235_v44 = vand.u32 4294901760, %v12_v9  ;;  %1433 = vmatpush1.bf16.msra.mxu1 %v2135_v48  ;;  %v2239_v13 = vsub.f32 %v66_v22, %v184_v0  ;;  %v192_v34 = vand.u32 4294901760, %v70_v19  ;;  %v77_v22 = vld [vmem:[%s2796_s0 + $0x1f8] sm:$0xff] }
  0x2c   :  { %3015 = vst [vmem:[#allocation73_spill] sm:$0xff] %v2200_v21  ;;  %3016 = vst [vmem:[#allocation74_spill] sm:$0xff] %v2202_v10  ;;  %v2227_v10 = vpack.c.bf16 %v186_v11, %v182_v15  ;;  %v2229_v21 = vsub.f32 %v67_v1, %v182_v15  ;;  %1625 = vmatpush1.bf16.msra.mxu0 %v2135_v48  ;;  %v196_v55 = vand.u32 4294901760, %v72_v37  ;;  %v75_v1 = vld [vmem:[%s2796_s0 + $0x1e8] sm:$0xff]  ;;  %1435 = vmatprep.subr.bf16.mxu1 %v2153_v59 }
  0x2d   :  { %3017 = vst [vmem:[#allocation75_spill] sm:$0xff] %v2215_v63  ;;  %3018 = vst [vmem:[#allocation76_spill] sm:$0xff] %v2217_v36  ;;  %v194_v36 = vand.u32 4294901760, %v73_v58  ;;  %v2245_v15 = vsub.f32 %v13_v20, %v2231_v38  ;;  %1627 = vmatprep.subr.bf16.mxu0 %v2153_v59  ;;  %v2249_v14 = vpack.c.bf16 %v188_v61, %v184_v0  ;;  %v237_v20 = vand.u32 4294901760, %v1930_v46 }
  0x2e   :  { %3019 = vst [vmem:[#allocation77_spill] sm:$0xff] %v2225_v28  ;;  %3020 = vst [vmem:[#allocation78_spill] sm:$0xff] %v2227_v10  ;;  %v2251_v11 = vsub.f32 %v68_v29, %v188_v61  ;;  %v2253_v48 = vsub.f32 %v71_v30, %v190_v40  ;;  %v243_v59 = vand.u32 4294901760, %v1940_v50  ;;  %v198_v30 = vand.u32 4294901760, %v75_v1  ;;  %v74_v28 = vld [vmem:[%s2796_s0 + $0x1e0] sm:$0xff] }
  0x2f   :  { %3021 = vst [vmem:[#allocation79_spill] sm:$0xff] %v2229_v21  ;;  %3022 = vst [vmem:[#allocation80_spill] sm:$0xff] %v2231_v38  ;;  %v231_v21 = vand.u32 4294901760, %v1932_v47  ;;  %v2263_v0 = vpack.c.bf16 %v194_v36, %v190_v40  ;;  %v2265_v29 = vsub.f32 %v73_v58, %v194_v36  ;;  %v2268_v61 = vsub.f32 %v12_v9, %v2235_v44  ;;  %v76_v58 = vld [vmem:[%s2796_s0 + $0x1f0] sm:$0xff]  ;;  %s1819_s0 = smov [#allocation2]  }
  0x30   :  { %3023 = vst [vmem:[#allocation81_spill] sm:$0xff] %v2233_v57  ;;  %3024 = vst [vmem:[#allocation82_spill] sm:$0xff] %v2235_v44  ;;  %v208_v57 = vand.u32 4294901760, %v2245_v15  ;;  %1437 = vmatpush1.bf16.msra.mxu1 %v2167_v42  ;;  %1629 = vmatpush1.bf16.msra.mxu0 %v2167_v42  ;;  %v249_v9 = vand.u32 4294901760, %v1942_v51  ;;  %v2284_v40 = vsub.f32 %v70_v19, %v192_v34  ;;  %v200_v38 = vand.u32 4294901760, %v74_v28  ;;  %s1386_s28 = sshll.u32 %s1819_s0, 4  ;;  %s1387_s28 = int_to_ptr.vmem [resolvable:$true] %s1386_s28 }
  0x31   :  { %3025 = vst [vmem:[#allocation83_spill] sm:$0xff] %v2239_v13  ;;  %3026 = vst [vmem:[#allocation84_spill] sm:$0xff] %v2245_v15  ;;  %v225_v13 = vand.u32 4294901760, %v1928_v45  ;;  %1439 = vmatprep.subr.bf16.mxu1 %v2175_v26  ;;  %1631 = vmatprep.subr.bf16.mxu0 %v2175_v26  ;;  %v2286_v42 = vsub.f32 %v72_v37, %v196_v55  ;;  %v238_v41 = vsub.f32 %v1930_v46, %v237_v20  ;;  %s1795_s29 = scalar_lea.vmem %s1387_s28, 128  ;;  %p1800_p1 = scmp.lt.s32.totalorder %s1387_s28, %s1387_s28 }
  0x32   :  { %3027 = vst [vmem:[#allocation85_spill] sm:$0xff] %v2249_v14  ;;  %3028 = vst [vmem:[#allocation86_spill] sm:$0xff] %v2251_v11  ;;  %v202_v11 = vand.u32 4294901760, %v77_v22  ;;  %v209_v36 = vsub.f32 %v2245_v15, %v208_v57  ;;  %950 = vmatprep.mubr.f32.mxu0 %v208_v57  ;;  %v232_v15 = vsub.f32 %v1932_v47, %v231_v21  ;;  %v204_v26 = vand.u32 4294901760, %v76_v58  ;;  %p1796_p0 = scmp.ne.s32.totalorder %s1387_s28, %s1795_s29  ;;  %p1801_p2 = scmp.lt.s32.totalorder %s1795_s29, %s1795_s29 }
  0x33   :  { %3029 = vst [vmem:[#allocation87_spill] sm:$0xff] %v2253_v48  ;;  %3030 = vst [vmem:[#allocation88_spill] sm:$0xff] %v2263_v0  ;;  %v2272_v48 = vpack.c.bf16 %v196_v55, %v192_v34  ;;  %v226_v44 = vsub.f32 %v1928_v45, %v225_v13  ;;  %v244_v62 = vsub.f32 %v1940_v50, %v243_v59  ;;  %v255_v57 = vand.u32 4294901760, %v1946_v53 }
  0x34   :  { %3031 = vst [vmem:[#allocation89_spill] sm:$0xff] %v2265_v29  ;;  %3032 = vst [vmem:[#allocation90_spill] sm:$0xff] %v2268_v61  ;;  %v261_v29 = vand.u32 4294901760, %v1944_v52  ;;  %v210_v43 = vand.u32 4294901760, %v209_v36  ;;  %v2293_v23 = vsub.f32 %v75_v1, %v198_v30  ;;  %1441 = vmatpush1.bf16.msra.mxu1 %v2187_v33  ;;  %1633 = vmatpush1.bf16.msra.mxu0 %v2187_v33  ;;  %v267_v55 = vand.u32 4294901760, %v1948_v54  ;;  %p1802_p3 = por %p1801_p2, %p1800_p1 }
  0x35   :  { %3033 = vst [vmem:[#allocation91_spill] sm:$0xff] %v2272_v48  ;;  %v250_v37 = vsub.f32 %v1942_v51, %v249_v9  ;;  %1443 = vmatprep.subr.bf16.mxu1 %v2198_v27  ;;  %1635 = vmatprep.subr.bf16.mxu0 %v2198_v27  ;;  %v2304_v1 = vpack.c.bf16 %v202_v11, %v198_v30  ;;  %v227_v33 = vand.u32 4294901760, %v226_v44  ;;  %v239_v50 = vand.u32 4294901760, %v238_v41 }
  0x36   :  { %v262_v34 = vsub.f32 %v1944_v52, %v261_v29  ;;  %v2306_v36 = vsub.f32 %v77_v22, %v202_v11  ;;  %v2308_v19 = vsub.f32 %v74_v28, %v200_v38  ;;  %211 = vmatprep.mubr.f32.mxu1 %v210_v43  ;;  %v233_v51 = vand.u32 4294901760, %v232_v15  ;;  %p1803_p4 = pnand %p1802_p3, %p1796_p0 }
  0x37   :  { %3034 = vst [vmem:[#allocation92_spill] sm:$0xff] %v2304_v1  ;;  %v245_v47 = vand.u32 4294901760, %v244_v62  ;;  %v2310_v52 = vpack.c.bf16 %v204_v26, %v200_v38  ;;  %v3037_v46 = vand.u32 4294901760, %v2268_v61  ;;  %v273_v27 = vand.u32 4294901760, %v1960_v60 }
  0x38   :  { %3035 = vst [vmem:[#allocation93_spill] sm:$0xff] %v2308_v19  ;;  %v285_v30 = vand.u32 4294901760, %v1973_v2  ;;  %1445 = vmatpush1.bf16.msra.mxu1 %v2215_v63  ;;  %1637 = vmatpush1.bf16.msra.mxu0 %v2215_v63  ;;  %v251_v28 = vand.u32 4294901760, %v250_v37  ;;  %v263_v43 = vand.u32 4294901760, %v262_v34  ;;  %v256_v41 = vsub.f32 %v1946_v53, %v255_v57 }
  0x39   :  { %3036 = vst [vmem:[#allocation94_spill] sm:$0xff] %v2310_v52  ;;  %v2315_v45 = vsub.f32 %v2268_v61, %v3037_v46  ;;  %v268_v38 = vsub.f32 %v1948_v54, %v267_v55  ;;  %1447 = vmatprep.subr.bf16.mxu1 %v2227_v10  ;;  %1639 = vmatprep.subr.bf16.mxu0 %v2227_v10  ;;  %v279_v15 = vand.u32 4294901760, %v1976_v3  ;;  %v291_v34 = vand.u32 4294901760, %v1979_v4 }
  0x3a   :  { %v2325_v46 = vsub.f32 %v76_v58, %v204_v26  ;;  %v1650_v62 = vpack.c.bf16 %v237_v20, %v225_v13  ;;  %v2327_v44 = vpack.c.bf16 %v243_v59, %v231_v21  ;;  %v1458_v11 = vpack.c.bf16 %v239_v50, %v227_v33 }
  0x3b   :  { %v2330_v22 = vpack.c.bf16 %v245_v47, %v233_v51  ;;  %v2332_v37 = vpack.c.bf16 %v261_v29, %v249_v9  ;;  %v216_v63 = vand.u32 4294901760, %v2315_v45  ;;  %v2336_v19 = vpack.c.bf16 %v267_v55, %v255_v57 }
  0x3c   :  { %3038 = vst [vmem:[#allocation95_spill] sm:$0xff] %v2325_v46  ;;  %v274_v10 = vsub.f32 %v1960_v60, %v273_v27  ;;  %v286_v26 = vsub.f32 %v1973_v2, %v285_v30  ;;  %1449 = vmatpush1.bf16.msra.mxu1 %v2249_v14  ;;  %1641 = vmatpush1.bf16.msra.mxu0 %v2249_v14  ;;  %v257_v47 = vand.u32 4294901760, %v256_v41  ;;  %v269_v50 = vand.u32 4294901760, %v268_v38 }
  0x3d   :  { %v2342_v21 = vpack.c.bf16 %v263_v43, %v251_v28  ;;  %v297_v51 = vand.u32 4294901760, %v1981_v5  ;;  %1451 = vmatprep.subr.bf16.mxu1 %v2263_v0  ;;  %1643 = vmatprep.subr.bf16.mxu0 %v2263_v0  ;;  %v280_v45 = vsub.f32 %v1976_v3, %v279_v15  ;;  %v309_v59 = vand.u32 4294901760, %v1983_v6 }
  0x3e   :  { %v303_v33 = vand.u32 4294901760, %v1985_v7  ;;  %v315_v13 = vand.u32 4294901760, %v1994_v12  ;;  %v292_v20 = vsub.f32 %v1979_v4, %v291_v34  ;;  %v321_v29 = vand.u32 4294901760, %v2000_v17 }
  0x3f   :  { %v333_v58 = vand.u32 4294901760, %v2002_v18  ;;  %v327_v9 = vand.u32 4294901760, %v2013_v24  ;;  %v275_v57 = vand.u32 4294901760, %v274_v10  ;;  %v287_v55 = vand.u32 4294901760, %v286_v26 }
  0x40   :  { %v2355_v28 = vpack.c.bf16 %v285_v30, %v273_v27  ;;  %v339_v43 = vand.u32 4294901760, %v2015_v25  ;;  %1453 = vmatpush1.bf16.msra.mxu1 %v2272_v48  ;;  %1645 = vmatpush1.bf16.msra.mxu0 %v2272_v48  ;;  %v1464_v41 = vpack.c.bf16 %v269_v50, %v257_v47  ;;  %v298_v38 = vsub.f32 %v1981_v5, %v297_v51 }
  0x41   :  { %v345_v0 = vand.u32 4294901760, %v2023_v31  ;;  %v357_v14 = vand.u32 4294901760, %v2025_v32  ;;  %1455 = vmatprep.subr.bf16.mxu1 %v2304_v1  ;;  %1647 = vmatprep.subr.bf16.mxu0 %v2304_v1  ;;  %v281_v10 = vand.u32 4294901760, %v280_v45  ;;  %v310_v27 = vsub.f32 %v1983_v6, %v309_v59 }
  0x42   :  { %v304_v30 = vsub.f32 %v1985_v7, %v303_v33  ;;  %v316_v26 = vsub.f32 %v1994_v12, %v315_v13  ;;  %v293_v46 = vand.u32 4294901760, %v292_v20  ;;  %v322_v47 = vsub.f32 %v2000_v17, %v321_v29 }
  0x43   :  { %v334_v50 = vsub.f32 %v2002_v18, %v333_v58  ;;  %v328_v48 = vsub.f32 %v2013_v24, %v327_v9  ;;  %v1466_v5 = vpack.c.bf16 %v287_v55, %v275_v57  ;;  %v2371_v4 = vpack.c.bf16 %v291_v34, %v279_v15 }
  0x44   :  { %v340_v3 = vsub.f32 %v2015_v25, %v339_v43  ;;  %v351_v45 = vand.u32 4294901760, %v2029_v35  ;;  %1457 = vmatpush1.bf16.msra.mxu1 %v2310_v52  ;;  %1649 = vmatpush1.bf16.msra.mxu0 %v2310_v52  ;;  %v299_v1 = vand.u32 4294901760, %v298_v38  ;;  %v2377_v12 = vpack.c.bf16 %v309_v59, %v297_v51 }
  0x45   :  { %v346_v20 = vsub.f32 %v2023_v31, %v345_v0  ;;  %v358_v18 = vsub.f32 %v2025_v32, %v357_v14  ;;  %1459 = vmatprep.subr.bf16.mxu1 %v1458_v11  ;;  %1651 = vmatprep.subr.bf16.mxu0 %v1650_v62  ;;  %v311_v57 = vand.u32 4294901760, %v310_v27  ;;  %v305_v15 = vand.u32 4294901760, %v304_v30  ;;  %v3094_v31 = vld [vmem:[#allocation47_spill] sm:$0xff] }
  0x46   :  { %v317_v34 = vand.u32 4294901760, %v316_v26  ;;  %v363_v55 = vand.u32 4294901760, %v2039_v39  ;;  %v1468_v25 = vpack.c.bf16 %v293_v46, %v281_v10  ;;  %v323_v24 = vand.u32 4294901760, %v322_v47  ;;  %v3111_v32 = vld [vmem:[#allocation71_spill] sm:$0xff] }
  0x47   :  { %v335_v17 = vand.u32 4294901760, %v334_v50  ;;  %v329_v7 = vand.u32 4294901760, %v328_v48  ;;  %217 = vmatmul.mubr.f32.vlgmr.msra.gmra.mrb[0].mxu1 %v216_v63  ;;  %v3039_v38 = vand.u32 4294901760, %v2268_v61  ;;  %v341_v51 = vand.u32 4294901760, %v340_v3  ;;  %v3044_v50 = vld [vmem:[#allocation47_spill] sm:$0xff] }
  0x48   :  { %v352_v59 = vsub.f32 %v2029_v35, %v351_v45  ;;  %v369_v52 = vand.u32 4294901760, %v2051_v49  ;;  %v381_v62 = vand.u32 4294901760, %v2053_v56  ;;  %1461 = vmatpush1.bf16.msra.mxu1 %v2330_v22  ;;  %v1664_v11 = vpack.c.bf16 %v315_v13, %v303_v33  ;;  %v3040_v33 = vld [vmem:[#allocation80_spill] sm:$0xff] }
  0x49   :  { %954 = vmatmul.mubr.f32.vlgmr.msra.gmra.mrb[0].mxu0 %v3039_v38  ;;  %v2389_v46 = vpack.c.bf16 %v333_v58, %v321_v29  ;;  %v347_v10 = vand.u32 4294901760, %v346_v20  ;;  %v359_v48 = vand.u32 4294901760, %v358_v18  ;;  %1463 = vmatprep.subr.bf16.mxu1 %v2342_v21  ;;  %v1470_v3 = vpack.c.bf16 %v311_v57, %v299_v1  ;;  %v3042_v13 = vld [vmem:[#allocation44_spill] sm:$0xff] }
  0x4a   :  { %1653 = vmatpush1.bf16.msra.mxu0 %v2327_v44  ;;  %v1472_v63 = vpack.c.bf16 %v317_v34, %v305_v15  ;;  %v364_v27 = vsub.f32 %v2039_v39, %v363_v55  ;;  %v375_v30 = vand.u32 4294901760, %v2063_v8  ;;  %v1474_v26 = vpack.c.bf16 %v335_v17, %v323_v24  ;;  %608 = vmatprep.mubr.f32.mxu1 %v3040_v33  ;;  %v3046_v15 = vld [vmem:[#allocation50_spill] sm:$0xff] }
  0x4b   :  { %1655 = vmatprep.subr.bf16.mxu0 %v2332_v37  ;;  %v2395_v47 = vpack.c.bf16 %v339_v43, %v327_v9  ;;  %v2397_v22 = vpack.c.bf16 %v357_v14, %v345_v0  ;;  %v387_v44 = vand.u32 4294901760, %v2071_v16  ;;  %v2401_v18 = vpack.c.bf16 %v341_v51, %v329_v7  ;;  %1217 = vmatprep.mubr.f32.mxu0 %v3040_v33  ;;  %v3041_v14 = vld [vmem:[#allocation42_spill] sm:$0xff] }
  0x4c   :  { %v353_v21 = vand.u32 4294901760, %v352_v59  ;;  %v370_v37 = vsub.f32 %v2051_v49, %v369_v52  ;;  %v382_v1 = vsub.f32 %v2053_v56, %v381_v62  ;;  %1465 = vmatpush1.bf16.msra.mxu1 %v1464_v41  ;;  %v2407_v17 = vpack.c.bf16 %v359_v48, %v347_v10  ;;  %v3043_v9 = vld [vmem:[#allocation46_spill] sm:$0xff] }
  0x4d   :  { %v2409_v24 = vpack.c.bf16 %v363_v55, %v351_v45  ;;  %v393_v0 = vand.u32 4294901760, %v3041_v14  ;;  %v405_v29 = vand.u32 4294901760, %v3042_v13  ;;  %1467 = vmatprep.subr.bf16.mxu1 %v1466_v5  ;;  %v365_v7 = vand.u32 4294901760, %v364_v27  ;;  %v3045_v45 = vld [vmem:[#allocation49_spill] sm:$0xff]  ;;  %v3047_v5 = vld [vmem:[#allocation52_spill] sm:$0xff]  ;;  %v3051_v49 = vld [vmem:[#allocation58_spill] sm:$0xff] }
  0x4e   :  { %1657 = vmatpush1.bf16.msra.mxu0 %v2336_v19  ;;  %v376_v58 = vsub.f32 %v2063_v8, %v375_v30  ;;  %v399_v43 = vand.u32 4294901760, %v3043_v9  ;;  %v411_v41 = vand.u32 4294901760, %v3044_v50  ;;  %v2417_v20 = vpack.c.bf16 %v381_v62, %v369_v52  ;;  %v3049_v62 = vld [vmem:[#allocation55_spill] sm:$0xff]  ;;  %v3050_v27 = vld [vmem:[#allocation56_spill] sm:$0xff]  ;;  %v3110_v39 = vld [vmem:[#allocation70_spill] sm:$0xff] }
  0x4f   :  { %1659 = vmatprep.subr.bf16.mxu0 %v2355_v28  ;;  %v388_v19 = vsub.f32 %v2071_v16, %v387_v44  ;;  %v417_v57 = vand.u32 4294901760, %v3045_v45  ;;  %v429_v34 = vand.u32 4294901760, %v3046_v15  ;;  %v371_v55 = vand.u32 4294901760, %v370_v37  ;;  %v3048_v28 = vld [vmem:[#allocation53_spill] sm:$0xff] }
  0x50   :  { %v383_v38 = vand.u32 4294901760, %v382_v1  ;;  %v423_v51 = vand.u32 4294901760, %v3047_v5  ;;  %v435_v59 = vand.u32 4294901760, %v3048_v28  ;;  %1469 = vmatpush1.bf16.msra.mxu1 %v1468_v25  ;;  %v394_v10 = vsub.f32 %v3041_v14, %v393_v0 }
  0x51   :  { %v406_v52 = vsub.f32 %v3042_v13, %v405_v29  ;;  %v441_v48 = vand.u32 4294901760, %v3049_v62  ;;  %v453_v61 = vand.u32 4294901760, %v3050_v27  ;;  %1471 = vmatprep.subr.bf16.mxu1 %v1470_v3  ;;  %v1480_v37 = vpack.c.bf16 %v365_v7, %v353_v21 }
  0x52   :  { %1661 = vmatpush1.bf16.msra.mxu0 %v2371_v4  ;;  %v377_v1 = vand.u32 4294901760, %v376_v58  ;;  %v400_v33 = vsub.f32 %v3043_v9, %v399_v43  ;;  %v412_v16 = vsub.f32 %v3044_v50, %v411_v41  ;;  %v389_v25 = vand.u32 4294901760, %v388_v19 }
  0x53   :  { %1663 = vmatprep.subr.bf16.mxu0 %v2377_v12  ;;  %v2432_v8 = vpack.c.bf16 %v387_v44, %v375_v30  ;;  %v418_v4 = vsub.f32 %v3045_v45, %v417_v57  ;;  %v430_v13 = vsub.f32 %v3046_v15, %v429_v34  ;;  %v1482_v14 = vpack.c.bf16 %v383_v38, %v371_v55  ;;  %v3052_v38 = vld [vmem:[#allocation59_spill] sm:$0xff] }
  0x54   :  { %v424_v56 = vsub.f32 %v3047_v5, %v423_v51  ;;  %v436_v3 = vsub.f32 %v3048_v28, %v435_v59  ;;  %v447_v12 = vand.u32 4294901760, %v3051_v49  ;;  %1473 = vmatpush1.bf16.msra.mxu1 %v1472_v63  ;;  %v395_v21 = vand.u32 4294901760, %v394_v10 }
  0x55   :  { %v407_v7 = vand.u32 4294901760, %v406_v52  ;;  %v442_v58 = vsub.f32 %v3049_v62, %v441_v48  ;;  %v454_v30 = vsub.f32 %v3050_v27, %v453_v61  ;;  %1475 = vmatprep.subr.bf16.mxu1 %v1474_v26  ;;  %v1678_v44 = vpack.c.bf16 %v405_v29, %v393_v0  ;;  %v3053_v62 = vld [vmem:[#allocation61_spill] sm:$0xff] }
  0x56   :  { %1665 = vmatpush1.bf16.msra.mxu0 %v1664_v11  ;;  %v401_v19 = vand.u32 4294901760, %v400_v33  ;;  %v413_v55 = vand.u32 4294901760, %v412_v16  ;;  %v459_v5 = vand.u32 4294901760, %v3052_v38  ;;  %v1484_v15 = vpack.c.bf16 %v389_v25, %v377_v1  ;;  %v3054_v33 = vld [vmem:[#allocation62_spill] sm:$0xff] }
  0x57   :  { %1667 = vmatprep.subr.bf16.mxu0 %v2389_v46  ;;  %v2443_v28 = vpack.c.bf16 %v411_v41, %v399_v43  ;;  %v419_v45 = vand.u32 4294901760, %v418_v4  ;;  %v431_v63 = vand.u32 4294901760, %v430_v13  ;;  %v425_v11 = vand.u32 4294901760, %v424_v56  ;;  %v3055_v43 = vld [vmem:[#allocation64_spill] sm:$0xff] }
  0x58   :  { %v437_v10 = vand.u32 4294901760, %v436_v3  ;;  %v448_v52 = vsub.f32 %v3051_v49, %v447_v12  ;;  %v465_v50 = vand.u32 4294901760, %v3053_v62  ;;  %1477 = vmatpush1.bf16.msra.mxu1 %v2401_v18  ;;  %v1486_v46 = vpack.c.bf16 %v407_v7, %v395_v21 }
  0x59   :  { %v443_v26 = vand.u32 4294901760, %v442_v58  ;;  %v455_v16 = vand.u32 4294901760, %v454_v30  ;;  %v477_v0 = vand.u32 4294901760, %v3054_v33  ;;  %1479 = vmatprep.subr.bf16.mxu1 %v2407_v17  ;;  %v1488_v13 = vpack.c.bf16 %v413_v55, %v401_v19  ;;  %v3060_v58 = vld [vmem:[#allocation71_spill] sm:$0xff]  ;;  %v3061_v19 = vld [vmem:[#allocation73_spill] sm:$0xff] }
  0x5a   :  { %1669 = vmatpush1.bf16.msra.mxu0 %v2395_v47  ;;  %v1682_v56 = vpack.c.bf16 %v429_v34, %v417_v57  ;;  %v460_v29 = vsub.f32 %v3052_v38, %v459_v5  ;;  %v471_v41 = vand.u32 4294901760, %v3055_v43  ;;  %v1490_v1 = vpack.c.bf16 %v431_v63, %v419_v45  ;;  %v3056_v47 = vld [vmem:[#allocation65_spill] sm:$0xff]  ;;  %v3057_v57 = vld [vmem:[#allocation67_spill] sm:$0xff]  ;;  %v3062_v63 = vld [vmem:[#allocation74_spill] sm:$0xff] }
  0x5b   :  { %1671 = vmatprep.subr.bf16.mxu0 %v2397_v22  ;;  %v2454_v25 = vpack.c.bf16 %v435_v59, %v423_v51  ;;  %v2456_v18 = vpack.c.bf16 %v453_v61, %v441_v48  ;;  %v483_v4 = vand.u32 4294901760, %v3056_v47  ;;  %v2459_v3 = vpack.c.bf16 %v437_v10, %v425_v11  ;;  %v3058_v61 = vld [vmem:[#allocation68_spill] sm:$0xff]  ;;  %v3059_v48 = vld [vmem:[#allocation70_spill] sm:$0xff] }
  0x5c   :  { %v449_v21 = vand.u32 4294901760, %v448_v52  ;;  %v2461_v7 = vpack.c.bf16 %v459_v5, %v447_v12  ;;  %v466_v22 = vsub.f32 %v3053_v62, %v465_v50  ;;  %1481 = vmatpush1.bf16.msra.mxu1 %v1480_v37  ;;  %v2465_v17 = vpack.c.bf16 %v455_v16, %v443_v26  ;;  %v3063_v52 = vld [vmem:[#allocation76_spill] sm:$0xff]  ;;  %v3064_v26 = vld [vmem:[#allocation77_spill] sm:$0xff]  ;;  %v3065_v16 = vld [vmem:[#allocation79_spill] sm:$0xff] }
  0x5d   :  { %v478_v45 = vsub.f32 %v3054_v33, %v477_v0  ;;  %v489_v34 = vand.u32 4294901760, %v3057_v57  ;;  %v501_v51 = vand.u32 4294901760, %v3058_v61  ;;  %1483 = vmatprep.subr.bf16.mxu1 %v1482_v14  ;;  %v461_v59 = vand.u32 4294901760, %v460_v29 }
  0x5e   :  { %1673 = vmatpush1.bf16.msra.mxu0 %v2409_v24  ;;  %v472_v5 = vsub.f32 %v3055_v43, %v471_v41  ;;  %v495_v12 = vand.u32 4294901760, %v3059_v48  ;;  %v507_v37 = vand.u32 4294901760, %v3060_v58  ;;  %v2474_v30 = vpack.c.bf16 %v477_v0, %v465_v50 }
  0x5f   :  { %1675 = vmatprep.subr.bf16.mxu0 %v2417_v20  ;;  %v484_v24 = vsub.f32 %v3056_v47, %v483_v4  ;;  %v513_v55 = vand.u32 4294901760, %v3061_v19  ;;  %v525_v11 = vand.u32 4294901760, %v3062_v63  ;;  %v467_v10 = vand.u32 4294901760, %v466_v22  ;;  %v3066_v47 = vld [vmem:[#allocation81_spill] sm:$0xff] }
  0x60   :  { %v519_v14 = vand.u32 4294901760, %v3063_v52  ;;  %v531_v20 = vand.u32 4294901760, %v3064_v26  ;;  %v537_v29 = vand.u32 4294901760, %v3065_v16  ;;  %1485 = vmatpush1.bf16.msra.mxu1 %v1484_v15  ;;  %v479_v43 = vand.u32 4294901760, %v478_v45 }
  0x61   :  { %v490_v50 = vsub.f32 %v3057_v57, %v489_v34  ;;  %v502_v0 = vsub.f32 %v3058_v61, %v501_v51  ;;  %v549_v33 = vand.u32 4294901760, %v3066_v47  ;;  %1487 = vmatprep.subr.bf16.mxu1 %v1486_v46  ;;  %v1496_v62 = vpack.c.bf16 %v461_v59, %v449_v21 }
  0x62   :  { %1677 = vmatpush1.bf16.msra.mxu0 %v2432_v8  ;;  %v473_v22 = vand.u32 4294901760, %v472_v5  ;;  %v496_v38 = vsub.f32 %v3059_v48, %v495_v12  ;;  %v508_v49 = vsub.f32 %v3060_v58, %v507_v37  ;;  %v485_v27 = vand.u32 4294901760, %v484_v24 }
  0x63   :  { %1679 = vmatprep.subr.bf16.mxu0 %v1678_v44  ;;  %v2488_v9 = vpack.c.bf16 %v483_v4, %v471_v41  ;;  %v514_v8 = vsub.f32 %v3061_v19, %v513_v55  ;;  %v526_v15 = vsub.f32 %v3062_v63, %v525_v11  ;;  %v520_v45 = vsub.f32 %v3063_v52, %v519_v14  ;;  %v3067_v41 = vld [vmem:[#allocation83_spill] sm:$0xff]  ;;  %v3068_v52 = vld [vmem:[#allocation86_spill] sm:$0xff] }
  0x64   :  { %v532_v61 = vsub.f32 %v3064_v26, %v531_v20  ;;  %v538_v46 = vsub.f32 %v3065_v16, %v537_v29  ;;  %v550_v44 = vsub.f32 %v3066_v47, %v549_v33  ;;  %1489 = vmatpush1.bf16.msra.mxu1 %v1488_v13  ;;  %v1498_v21 = vpack.c.bf16 %v479_v43, %v467_v10 }
  0x65   :  { %v491_v59 = vand.u32 4294901760, %v490_v50  ;;  %v503_v5 = vand.u32 4294901760, %v502_v0  ;;  %v2940_v4 = vand.u32 4294901760, %v3067_v41  ;;  %1491 = vmatprep.subr.bf16.mxu1 %v1490_v1  ;;  %v1694_v24 = vpack.c.bf16 %v501_v51, %v489_v34 }
  0x66   :  { %1681 = vmatpush1.bf16.msra.mxu0 %v2443_v28  ;;  %v497_v63 = vand.u32 4294901760, %v496_v38  ;;  %v509_v19 = vand.u32 4294901760, %v508_v49  ;;  %v2939_v58 = vand.u32 4294901760, %v3068_v52  ;;  %v1500_v26 = vpack.c.bf16 %v485_v27, %v473_v22  ;;  %v3069_v27 = vld [vmem:[#allocation87_spill] sm:$0xff] }
  0x67   :  { %1683 = vmatprep.subr.bf16.mxu0 %v1682_v56  ;;  %v2499_v48 = vpack.c.bf16 %v507_v37, %v495_v12  ;;  %v515_v16 = vand.u32 4294901760, %v514_v8  ;;  %v527_v47 = vand.u32 4294901760, %v526_v15  ;;  %v521_v13 = vand.u32 4294901760, %v520_v45 }
  0x68   :  { %v533_v57 = vand.u32 4294901760, %v532_v61  ;;  %v539_v28 = vand.u32 4294901760, %v538_v46  ;;  %v551_v43 = vand.u32 4294901760, %v550_v44  ;;  %1493 = vmatpush1.bf16.msra.mxu1 %v2459_v3  ;;  %v1502_v1 = vpack.c.bf16 %v503_v5, %v491_v59  ;;  %v3077_v46 = vld [vmem:[#allocation20_spill] sm:$0xff]  ;;  %v3078_v44 = vld [vmem:[#allocation21_spill] sm:$0xff]  ;;  %v3079_v5 = vld [vmem:[#allocation22_spill] sm:$0xff] }
  0x69   :  { %v2503_v56 = vpack.c.bf16 %v525_v11, %v513_v55  ;;  %v2508_v49 = vsub.f32 %v3067_v41, %v2940_v4  ;;  %v2938_v38 = vand.u32 4294901760, %v3069_v27  ;;  %1495 = vmatprep.subr.bf16.mxu1 %v2465_v17  ;;  %v1504_v34 = vpack.c.bf16 %v509_v19, %v497_v63  ;;  %v3071_v19 = vld [vmem:[#allocation12_spill] sm:$0xff]  ;;  %v3072_v63 = vld [vmem:[#allocation13_spill] sm:$0xff]  ;;  %v3093_v4 = vld [vmem:[#allocation46_spill] sm:$0xff] }
  0x6a   :  { %1685 = vmatpush1.bf16.msra.mxu0 %v2454_v25  ;;  %v2516_v3 = vsub.f32 %v3068_v52, %v2939_v58  ;;  %v3070_v25 = vld [vmem:[#allocation89_spill] sm:$0xff]  ;;  %v2936_v51 = vand.u32 4294901760, %v2284_v40  ;;  %v1506_v12 = vpack.c.bf16 %v527_v47, %v515_v16  ;;  %v2520_v37 = vpack.c.bf16 %v531_v20, %v519_v14  ;;  %v3073_v47 = vld [vmem:[#allocation14_spill] sm:$0xff]  ;;  %v3074_v14 = vld [vmem:[#allocation15_spill] sm:$0xff] }
  0x6b   :  { %1687 = vmatprep.subr.bf16.mxu0 %v2456_v18  ;;  %v2937_v61 = vand.u32 4294901760, %v3070_v25  ;;  %v2522_v55 = vpack.c.bf16 %v549_v33, %v537_v29  ;;  %v2935_v11 = vand.u32 4294901760, %v2286_v42  ;;  %v1508_v17 = vpack.c.bf16 %v533_v57, %v521_v13  ;;  %v3075_v20 = vld [vmem:[#allocation16_spill] sm:$0xff]  ;;  %v3076_v16 = vld [vmem:[#allocation17_spill] sm:$0xff]  ;;  %v3101_v29 = vld [vmem:[#allocation58_spill] sm:$0xff] }
  0x6c   :  { %v2525_v10 = vpack.c.bf16 %v551_v43, %v539_v28  ;;  %v2934_v18 = vand.u32 4294901760, %v2293_v23  ;;  %1497 = vmatpush1.bf16.msra.mxu1 %v1496_v62  ;;  %v545_v0 = vand.u32 4294901760, %v2508_v49  ;;  %v2535_v33 = vsub.f32 %v3069_v27, %v2938_v38  ;;  %v3080_v28 = vld [vmem:[#allocation23_spill] sm:$0xff]  ;;  %v3081_v43 = vld [vmem:[#allocation24_spill] sm:$0xff]  ;;  %v3113_v57 = vld [vmem:[#allocation74_spill] sm:$0xff] }
  0x6d   :  { %1499 = vmatprep.subr.bf16.mxu1 %v1498_v21  ;;  %v557_v62 = vand.u32 4294901760, %v2516_v3  ;;  %v2549_v22 = vsub.f32 %v2284_v40, %v2936_v51  ;;  %v2945_v8 = vand.u32 4294901760, %v2306_v36  ;;  %v580_v15 = vsub.f32 %v2286_v42, %v2935_v11  ;;  %v3092_v58 = vld [vmem:[#allocation44_spill] sm:$0xff]  ;;  %v3107_v13 = vld [vmem:[#allocation95_spill] sm:$0xff]  ;;  %v3112_v21 = vld [vmem:[#allocation73_spill] sm:$0xff] }
  0x6e   :  { %1689 = vmatpush1.bf16.msra.mxu0 %v2461_v7  ;;  %v574_v7 = vsub.f32 %v3070_v25, %v2937_v61  ;;  %v2564_v59 = vsub.f32 %v2293_v23, %v2934_v18  ;;  %v563_v45 = vand.u32 4294901760, %v2535_v33  ;;  %v3102_v33 = vld [vmem:[#allocation59_spill] sm:$0xff]  ;;  %v603_v35 = vand.u32 4294901760, %v3107_v13  ;;  %v3114_v11 = vld [vmem:[#allocation76_spill] sm:$0xff]  ;;  %v3115_v38 = vld [vmem:[#allocation77_spill] sm:$0xff] }
  0x6f   :  { %1691 = vmatprep.subr.bf16.mxu0 %v2474_v30  ;;  %v598_v30 = vsub.f32 %v2306_v36, %v2945_v8  ;;  %v3119_v18 = vand.u32 4294901760, %v3068_v52  ;;  %v569_v8 = vand.u32 4294901760, %v2549_v22  ;;  %v581_v50 = vand.u32 4294901760, %v580_v15 }
  0x70   :  { %1501 = vmatpush1.bf16.msra.mxu1 %v1500_v26  ;;  %v3086_v26 = vld [vmem:[#allocation93_spill] sm:$0xff]  ;;  %v575_v51 = vand.u32 4294901760, %v574_v7  ;;  %v1512_v7 = vpack.c.bf16 %v557_v62, %v545_v0  ;;  %v604_v61 = vsub.f32 %v3107_v13, %v603_v35  ;;  %v3120_v62 = vand.u32 4294901760, %v3069_v27 }
  0x71   :  { %1503 = vmatprep.subr.bf16.mxu1 %v1502_v1  ;;  %v591_v49 = vand.u32 4294901760, %v3086_v26  ;;  %v3108_v1 = vld [vmem:[#allocation67_spill] sm:$0xff]  ;;  %v1516_v22 = vpack.c.bf16 %v581_v50, %v569_v8  ;;  %v3122_v15 = vand.u32 4294901760, %v2284_v40  ;;  %v3126_v50 = vpack.c.bf16 %v3072_v63, %v3071_v19  ;;  %v3128_v8 = vld [vmem:[#allocation82_spill] sm:$0xff]  ;;  %v3133_v19 = vld [vmem:[#allocation84_spill] sm:$0xff] }
  0x72   :  { %1693 = vmatpush1.bf16.msra.mxu0 %v2488_v9  ;;  %v1514_v0 = vpack.c.bf16 %v575_v51, %v563_v45  ;;  %v3125_v45 = vand.u32 4294901760, %v2306_v36  ;;  %v3134_v63 = vld [vmem:[#allocation80_spill] sm:$0xff] }
  0x73   :  { %1695 = vmatprep.subr.bf16.mxu0 %v1694_v24  ;;  %v3109_v24 = vld [vmem:[#allocation68_spill] sm:$0xff]  ;;  %v592_v3 = vsub.f32 %v3086_v26, %v591_v49  ;;  %v605_v26 = vand.u32 4294901760, %v604_v61  ;;  %v3127_v61 = vld [vmem:[#allocation5_spill] sm:$0xff] }
  0x74   :  { %1505 = vmatpush1.bf16.msra.mxu1 %v1504_v34  ;;  %v3118_v34 = vand.u32 4294901760, %v3067_v41 }
  0x75   :  { %1507 = vmatprep.subr.bf16.mxu1 %v1506_v12 }
  0x76   :  { %1697 = vmatpush1.bf16.msra.mxu0 %v2499_v48  ;;  %v3117_v48 = vld [vmem:[#allocation81_spill] sm:$0xff]  ;;  %v1704_v9 = vpack.c.bf16 %v3119_v18, %v3118_v34  ;;  %v3123_v34 = vand.u32 4294901760, %v2286_v42 }
  0x77   :  { %1699 = vmatprep.subr.bf16.mxu0 %v2503_v56  ;;  %v3121_v56 = vand.u32 4294901760, %v3070_v25 }
  0x78   :  { %1509 = vmatpush1.bf16.msra.mxu1 %v1508_v17  ;;  %v587_v17 = vand.u32 4294901760, %v2564_v59  ;;  %v1708_v12 = vpack.c.bf16 %v3123_v34, %v3122_v15  ;;  %v1712_v59 = vpack.c.bf16 %v603_v35, %v591_v49  ;;  %v3131_v35 = vpack.c.bf16 %v3076_v16, %v3075_v20  ;;  %v3132_v49 = vld [vmem:[#allocation7_spill] sm:$0xff]  ;;  %v3140_v16 = vld [vmem:[#allocation10_spill] sm:$0xff] }
  0x79   :  { %1511 = vmatprep.subr.bf16.mxu1 %v2525_v10  ;;  %v1706_v18 = vpack.c.bf16 %v3121_v56, %v3120_v62  ;;  %v593_v10 = vand.u32 4294901760, %v592_v3  ;;  %v3129_v3 = vpack.c.bf16 %v3074_v14, %v3073_v47  ;;  %v3137_v47 = vpack.c.bf16 %v1973_v2, %v1960_v60  ;;  %v3138_v14 = vld [vmem:[#allocation9_spill] sm:$0xff]  ;;  %v3144_v60 = vld [vmem:[#allocation18_spill] sm:$0xff]  ;;  %v3145_v2 = vld [vmem:[#allocation27_spill] sm:$0xff] }
  0x7a   :  { %1701 = vmatpush1.bf16.msra.mxu0 %v2520_v37  ;;  %v599_v37 = vand.u32 4294901760, %v598_v30  ;;  %v3139_v20 = vpack.c.bf16 %v3078_v44, %v3077_v46  ;;  %v3148_v46 = vld [vmem:[#allocation19_spill] sm:$0xff]  ;;  %v3149_v44 = vld [vmem:[#allocation30_spill] sm:$0xff] }
  0x7b   :  { %1703 = vmatprep.subr.bf16.mxu0 %v2522_v55  ;;  %v3124_v55 = vand.u32 4294901760, %v2293_v23  ;;  %v1520_v30 = vpack.c.bf16 %v605_v26, %v593_v10  ;;  %v3130_v26 = vld [vmem:[#allocation6_spill] sm:$0xff]  ;;  %v3160_v10 = vld [vmem:[#allocation33_spill] sm:$0xff] }
  0x7c   :  { %1513 = vmatpush1.bf16.msra.mxu1 %v1512_v7  ;;  %v1518_v51 = vpack.c.bf16 %v599_v37, %v587_v17  ;;  %v3141_v7 = vpack.c.bf16 %v1983_v6, %v3079_v5  ;;  %v3152_v6 = vld [vmem:[#allocation25_spill] sm:$0xff]  ;;  %v3153_v5 = vld [vmem:[#allocation32_spill] sm:$0xff]  ;;  %v3154_v37 = vld [vmem:[#allocation31_spill] sm:$0xff] }
  0x7d   :  { %1515 = vmatprep.subr.bf16.mxu1 %v1514_v0  ;;  %v1710_v56 = vpack.c.bf16 %v3125_v45, %v3124_v55  ;;  %v3146_v0 = vld [vmem:[#allocation26_spill] sm:$0xff]  ;;  %v3162_v55 = vld [vmem:[#allocation37_spill] sm:$0xff] }
  0x7e   :  { %1705 = vmatpush1.bf16.msra.mxu0 %v1704_v9  ;;  %v3135_v9 = vpack.c.bf16 %v1948_v54, %v1946_v53  ;;  %v3142_v53 = vld [vmem:[#allocation11_spill] sm:$0xff]  ;;  %v3143_v54 = vpack.c.bf16 %v3081_v43, %v3080_v28  ;;  %v3147_v62 = vpack.c.bf16 %v3145_v2, %v3146_v0  ;;  %v3156_v28 = vld [vmem:[#allocation28_spill] sm:$0xff]  ;;  %v3158_v15 = vld [vmem:[#allocation34_spill] sm:$0xff] }
  0x7f   :  { %1707 = vmatprep.subr.bf16.mxu0 %v1706_v18  ;;  %v3150_v18 = vld [vmem:[#allocation29_spill] sm:$0xff]  ;;  %v3157_v43 = vld [vmem:[#allocation35_spill] sm:$0xff]  ;;  %v3188_v2 = vld [vmem:[#allocation62_spill] sm:$0xff] }
  0x80   :  { %1517 = vmatpush1.bf16.msra.mxu1 %v1516_v22  ;;  %v3151_v17 = vpack.c.bf16 %v3149_v44, %v3150_v18  ;;  %v3155_v22 = vpack.c.bf16 %v3153_v5, %v3154_v37  ;;  %v3159_v34 = vpack.c.bf16 %v3157_v43, %v3158_v15  ;;  %v3189_v0 = vld [vmem:[#allocation61_spill] sm:$0xff]  ;;  %v3193_v18 = vld [vmem:[#allocation64_spill] sm:$0xff]  ;;  %v3196_v5 = vpack.c.bf16 %v3109_v24, %v3108_v1  ;;  %v3203_v1 = vld [vmem:[#allocation75_spill] sm:$0xff] }
  0x81   :  { %1519 = vmatprep.subr.bf16.mxu1 %v1518_v51  ;;  %v3161_v51 = vld [vmem:[#allocation38_spill] sm:$0xff]  ;;  %v3192_v44 = vld [vmem:[#allocation65_spill] sm:$0xff]  ;;  %v3202_v43 = vpack.c.bf16 %v3115_v38, %v3114_v11  ;;  %v3204_v24 = vld [vmem:[#allocation79_spill] sm:$0xff]  ;;  %v3211_v11 = vpack.c.bf16 %v2286_v42, %v2284_v40 }
  0x82   :  { %1709 = vmatpush1.bf16.msra.mxu0 %v1708_v12  ;;  %v3136_v12 = vld [vmem:[#allocation8_spill] sm:$0xff]  ;;  %v3163_v45 = vpack.c.bf16 %v3161_v51, %v3162_v55  ;;  %v3199_v37 = vld [vmem:[#allocation69_spill] sm:$0xff]  ;;  %v3205_v15 = vpack.c.bf16 %v3117_v48, %v3204_v24  ;;  %v3212_v48 = vld [vmem:[#allocation91_spill] sm:$0xff] }
  0x83   :  { %1711 = vmatprep.subr.bf16.mxu0 %v1710_v56  ;;  %v3164_v56 = vld [vmem:[#allocation36_spill] sm:$0xff] }
  0x84   :  { %1521 = vmatpush1.bf16.msra.mxu1 %v1520_v30  ;;  %v3165_v30 = vld [vmem:[#allocation41_spill] sm:$0xff]  ;;  %v3210_v38 = vld [vmem:[#allocation88_spill] sm:$0xff] }
  0x85   :  { %1523 = vmatprep.subr.bf16.mxu1 %v3126_v50 }
  0x86   :  { %1713 = vmatpush1.bf16.msra.mxu0 %v1712_v59  ;;  %v3166_v59 = vld [vmem:[#allocation40_spill] sm:$0xff] }
  0x87   :  { %1715 = vmatprep.subr.bf16.mxu0 %v3127_v61  ;;  %610 = vmatmul.mubr.f32.vlgmr.msra.gmra.mrb[0].mxu1 %v3128_v8  ;;  %v3167_v50 = vpack.c.bf16 %v3165_v30, %v3166_v59  ;;  %v3168_v61 = vld [vmem:[#allocation39_spill] sm:$0xff] }
  0x88   :  { %1525 = vmatpush1.bf16.msra.mxu1 %v3129_v3  ;;  %810 = vmatprep.mubr.f32.mxu1 %v3133_v19  ;;  %v3169_v3 = vld [vmem:[#allocation42_spill] sm:$0xff]  ;;  %v3173_v19 = vld [vmem:[#allocation45_spill] sm:$0xff] }
  0x89   :  { %1219 = vmatmul.mubr.f32.vlgmr.msra.gmra.mrb[0].mxu0 %v3128_v8  ;;  %1527 = vmatprep.subr.bf16.mxu1 %v3131_v35  ;;  %v3171_v35 = vld [vmem:[#allocation43_spill] sm:$0xff] }
  0x8a   :  { %1717 = vmatpush1.bf16.msra.mxu0 %v3130_v26  ;;  %1354 = vmatprep.mubr.f32.mxu0 %v3134_v63  ;;  %v3170_v26 = vpack.c.bf16 %v3092_v58, %v3169_v3  ;;  %v3174_v63 = vld [vmem:[#allocation50_spill] sm:$0xff]  ;;  %v3181_v58 = vld [vmem:[#allocation51_spill] sm:$0xff] }
  0x8b   :  { %1719 = vmatprep.subr.bf16.mxu0 %v3132_v49  ;;  %v3172_v49 = vpack.c.bf16 %v3094_v31, %v3093_v4  ;;  %v3185_v31 = vld [vmem:[#allocation54_spill] sm:$0xff]  ;;  %v3186_v4 = vpack.c.bf16 %v3102_v33, %v3101_v29  ;;  %v3198_v33 = vpack.c.bf16 %v3111_v32, %v3110_v39  ;;  %v3207_v39 = vpack.c.bf16 %v3068_v52, %v3067_v41  ;;  %v3214_v52 = vld [vmem:[#allocation92_spill] sm:$0xff]  ;;  %v3215_v41 = vld [vmem:[#allocation93_spill] sm:$0xff] }
  0x8c   :  { %1529 = vmatpush1.bf16.msra.mxu1 %v3135_v9  ;;  %v3175_v9 = vld [vmem:[#allocation49_spill] sm:$0xff]  ;;  %v3197_v29 = vld [vmem:[#allocation66_spill] sm:$0xff] }
  0x8d   :  { %1531 = vmatprep.subr.bf16.mxu1 %v3137_v47  ;;  %v3177_v47 = vld [vmem:[#allocation48_spill] sm:$0xff]  ;;  %v3206_v32 = vld [vmem:[#allocation78_spill] sm:$0xff] }
  0x8e   :  { %1721 = vmatpush1.bf16.msra.mxu0 %v3136_v12  ;;  %v3176_v12 = vpack.c.bf16 %v3174_v63, %v3175_v9 }
  0x8f   :  { %1723 = vmatprep.subr.bf16.mxu0 %v3138_v14  ;;  %v3178_v14 = vld [vmem:[#allocation53_spill] sm:$0xff] }
  0x90   :  { %1533 = vmatpush1.bf16.msra.mxu1 %v3139_v20  ;;  %v3179_v20 = vld [vmem:[#allocation52_spill] sm:$0xff] }
  0x91   :  { %1535 = vmatprep.subr.bf16.mxu1 %v3141_v7  ;;  %v3182_v7 = vld [vmem:[#allocation56_spill] sm:$0xff] }
  0x92   :  { %1725 = vmatpush1.bf16.msra.mxu0 %v3140_v16  ;;  %v3180_v16 = vpack.c.bf16 %v3178_v14, %v3179_v20 }
  0x93   :  { %1727 = vmatprep.subr.bf16.mxu0 %v3142_v53  ;;  %v3183_v53 = vld [vmem:[#allocation55_spill] sm:$0xff] }
  0x94   :  { %1537 = vmatpush1.bf16.msra.mxu1 %v3143_v54  ;;  %v3184_v54 = vpack.c.bf16 %v3182_v7, %v3183_v53 }
  0x95   :  { %1539 = vmatprep.subr.bf16.mxu1 %v3147_v62  ;;  %v3190_v62 = vpack.c.bf16 %v3188_v2, %v3189_v0 }
  0x96   :  { %1729 = vmatpush1.bf16.msra.mxu0 %v3144_v60  ;;  %v3187_v60 = vld [vmem:[#allocation57_spill] sm:$0xff] }
  0x97   :  { %1731 = vmatprep.subr.bf16.mxu0 %v3148_v46  ;;  %v3191_v46 = vld [vmem:[#allocation60_spill] sm:$0xff] }
  0x98   :  { %1541 = vmatpush1.bf16.msra.mxu1 %v3151_v17  ;;  %v3194_v17 = vpack.c.bf16 %v3192_v44, %v3193_v18 }
  0x99   :  { %1543 = vmatprep.subr.bf16.mxu1 %v3155_v22  ;;  %v3200_v22 = vpack.c.bf16 %v3113_v57, %v3112_v21  ;;  %v3208_v57 = vld [vmem:[#allocation85_spill] sm:$0xff]  ;;  %v3209_v21 = vpack.c.bf16 %v3070_v25, %v3069_v27  ;;  %v3217_v27 = vld [vmem:[#allocation94_spill] sm:$0xff] }
  0x9a   :  { %1733 = vmatpush1.bf16.msra.mxu0 %v3152_v6  ;;  %v3195_v6 = vld [vmem:[#allocation63_spill] sm:$0xff]  ;;  %v3218_v25 = vld [vmem:[#allocation90_spill] sm:$0xff] }
  0x9b   :  { %1735 = vmatprep.subr.bf16.mxu0 %v3156_v28  ;;  %v3201_v28 = vld [vmem:[#allocation72_spill] sm:$0xff] }
  0x9c   :  { %1545 = vmatpush1.bf16.msra.mxu1 %v3159_v34  ;;  %v3213_v34 = vpack.c.bf16 %v2306_v36, %v2293_v23 }
  0x9d   :  { %1547 = vmatprep.subr.bf16.mxu1 %v3163_v45 }
  0x9e   :  { %1737 = vmatpush1.bf16.msra.mxu0 %v3160_v10  ;;  %v3216_v10 = vpack.c.bf16 %v3107_v13, %v3215_v41 }
  0x9f   :  { %1739 = vmatprep.subr.bf16.mxu0 %v3164_v56 }
  0xa0   :  { %1549 = vmatpush1.bf16.msra.mxu1 %v3167_v50 }
  0xa1   :  { %1551 = vmatprep.subr.bf16.mxu1 %v3170_v26 }
  0xa2   :  { %1741 = vmatpush1.bf16.msra.mxu0 %v3168_v61 }
  0xa3   :  { %1743 = vmatprep.subr.bf16.mxu0 %v3171_v35 }
  0xa4   :  { %1553 = vmatpush1.bf16.msra.mxu1 %v3172_v49 }
  0xa5   :  { %1555 = vmatprep.subr.bf16.mxu1 %v3176_v12 }
  0xa6   :  { %1745 = vmatpush1.bf16.msra.mxu0 %v3173_v19 }
  0xa7   :  { %1747 = vmatprep.subr.bf16.mxu0 %v3177_v47 }
  0xa8   :  { %1557 = vmatpush1.bf16.msra.mxu1 %v3180_v16 }
  0xa9   :  { %1559 = vmatprep.subr.bf16.mxu1 %v3184_v54 }
  0xaa   :  { %1749 = vmatpush1.bf16.msra.mxu0 %v3181_v58 }
  0xab   :  { %1751 = vmatprep.subr.bf16.mxu0 %v3185_v31 }
  0xac   :  { %1561 = vmatpush1.bf16.msra.mxu1 %v3186_v4 }
  0xad   :  { %1563 = vmatprep.subr.bf16.mxu1 %v3190_v62 }
  0xae   :  { %1753 = vmatpush1.bf16.msra.mxu0 %v3187_v60 }
  0xaf   :  { %1755 = vmatprep.subr.bf16.mxu0 %v3191_v46 }
  0xb0   :  { %1565 = vmatpush1.bf16.msra.mxu1 %v3194_v17 }
  0xb1   :  { %1567 = vmatprep.subr.bf16.mxu1 %v3196_v5 }
  0xb2   :  { %1757 = vmatpush1.bf16.msra.mxu0 %v3195_v6 }
  0xb3   :  { %1759 = vmatprep.subr.bf16.mxu0 %v3197_v29 }
  0xb4   :  { %1569 = vmatpush1.bf16.msra.mxu1 %v3198_v33 }
  0xb5   :  { %1571 = vmatprep.subr.bf16.mxu1 %v3200_v22 }
  0xb6   :  { %1761 = vmatpush1.bf16.msra.mxu0 %v3199_v37 }
  0xb7   :  { %1763 = vmatprep.subr.bf16.mxu0 %v3201_v28 }
  0xb8   :  { %1573 = vmatpush1.bf16.msra.mxu1 %v3202_v43 }
  0xb9   :  { %1575 = vmatprep.subr.bf16.mxu1 %v3205_v15 }
  0xba   :  { %1765 = vmatpush1.bf16.msra.mxu0 %v3203_v1 }
  0xbb   :  { %1767 = vmatprep.subr.bf16.mxu0 %v3206_v32 }
  0xbc   :  { %1577 = vmatpush1.bf16.msra.mxu1 %v3207_v39 }
  0xbd   :  { %1579 = vmatprep.subr.bf16.mxu1 %v3209_v21 }
  0xbe   :  { %1769 = vmatpush1.bf16.msra.mxu0 %v3208_v57 }
  0xbf   :  { %1771 = vmatprep.subr.bf16.mxu0 %v3210_v38 }
  0xc0   :  { %1581 = vmatpush1.bf16.msra.mxu1 %v3211_v11 }
  0xc1   :  { %1583 = vmatprep.subr.bf16.mxu1 %v3213_v34 }
  0xc2   :  { %1773 = vmatpush1.bf16.msra.mxu0 %v3212_v48 }
  0xc3   :  { %1775 = vmatprep.subr.bf16.mxu0 %v3214_v52 }
  0xc4   :  { %1585 = vmatpush1.bf16.msra.mxu1 %v3216_v10 }
  0xc6   :  { %1777 = vmatpush1.bf16.msra.mxu0 %v3217_v27 }
  0xc7   :  { %813 = vmatmul.mubr.f32.vlgmr.msra.gmra.mrb[0].mxu1 %v3218_v25 }
  0xc9   :  { %1356 = vmatmul.mubr.f32.vlgmr.msra.gmra.mrb[0].mxu0 %v3128_v8 }
 0x19a   :  { %v814_v42 = vpop.f32.mrb[0].mxu1 }
 0x19b   :  { %v816_v55 = vpop.f32.mrb[1].mxu1 }
 0x19c   :  { %v1357_v40 = vpop.f32.mrb[0].mxu0 }
 0x19d   :  { %v1778_v51 = vadd.f32 %v1357_v40, %v814_v42  ;;  %v1359_v45 = vpop.f32.mrb[1].mxu0 }
 0x19e   :  { %v1779_v56 = vadd.f32 %v1359_v45, %v816_v55 }
 0x1a0   :  { %v1362_v23 = vmul.f32 0.0625, %v1779_v56  ;;  %v1364_v36 = vmul.f32 0.66, %v1779_v56 }
 0x1a2   :  { %v1365_v30 = vadd.f32 9.0, %v1364_v36  ;;  %1789 = vrcp.f32 %v1362_v23  ;;  %v1377_v9 = vmul.f32 -1.3, %v1362_v23 }
 0x1a4   :  { %v1366_v59 = vsub.f32 %v1778_v51, %v1365_v30 }
 0x1ac   :  { %v1790_v50 = vpop.eup %1789 }
 0x1ad   :  { %v1368_v13 = vmul.f32 %v1790_v50, %v1366_v59 }
 0x1af   :  { %v1369_v61 = vmin.f32 %v1368_v13, 80.0 }
 0x1b1   :  { %v1370_v3 = vmul.f32 1.442695, %v1369_v61 }
 0x1b3   :  { %1791 = vpow2.f32 %v1370_v3 }
 0x1bd   :  { %v1792_v26 = vpop.eup %1791 }
 0x1be   :  { %v1372_v35 = vadd.f32 1.0, %v1792_v26 }
 0x1c0   :  { %1793 = vrcp.f32 %v1372_v35 }
 0x1ca   :  { %v1794_v8 = vpop.eup %1793 }
 0x1cb   :  { %v1374_v49 = vmul.f32 %v1794_v8, %v1372_v35 }
 0x1cd   :  { %v1375_v19 = vsub.f32 2.0, %v1374_v49 }
 0x1cf   :  { %v1376_v63 = vmul.f32 %v1794_v8, %v1375_v19 }
 0x1d1   :  { %v1378_v12 = vmul.f32 %v1377_v9, %v1376_v63 }
 0x1d3   :  { %1379 = vst [vmem:[#allocation2] sm:$0xff] %v1378_v12 }
 0x1d4   :  { %1806 = shalt.err (!%p1803_p4)
}
 0x1d5   :  { %s1807_s4 = scalar_lea.hbm %s2798_s2, 128 }
 0x1d6   :  { %p1808_p5 = scmp.ne.s32.totalorder %s2798_s2, %s1807_s4  ;;  %p1811_p6 = scmp.lt.u32.totalorder %s1807_s4, %s2798_s2 }
 0x1d8   :  { %p1813_p7 = pnand %p1811_p6, %p1808_p5 }
 0x1da   :  { %1816 = shalt.err (!%p1813_p7)
}
 0x1db   :  { %1389 = dma.vmem_to_hbm [thread:$0]  %s1387_s28, 128, %s2798_s2, [#allocation3]  }
 0x1dc   :  { %1817 = dma.done.wait [#allocation3], 128  }
 0x1dd   :  { %1818 = vsyncadd [#allocation3], 4294967168 }
 0x1de   :  { %1393 = vsyncpa [#allocation3], 1 }

</bundles_post_ra>
